<compile_context>
chip_gen: v7x
topology: tpu7x:2x2x1
jax: 0.10.0
libtpu: 0.0.40
codegen_flags: <defaults>
</compile_context>

<pallas_src>
import functools

import numpy as np
import jax
import jax.numpy as jnp
from jax.experimental import pallas as pl
from jax.experimental.pallas import tpu as pltpu

NUM_HEADS = 8
MLP_HIDDEN = 512
LN_EPS = 1e-6


def _gelu_tanh(x):
    c = jnp.sqrt(2.0 / jnp.pi).astype(x.dtype)
    return 0.5 * x * (1.0 + jnp.tanh(c * (x + 0.044715 * x * x * x)))


def _layernorm(x, g, b):
    mu = jnp.mean(x, axis=-1, keepdims=True)
    var = jnp.mean((x - mu) ** 2, axis=-1, keepdims=True)
    return (x - mu) * jax.lax.rsqrt(var + LN_EPS) * g + b


def block_kernel(x_ref, slab_ref, wq_ref, wkv_ref, seg_ref, exp_ref, projw_ref,
                 w1_ref, b1_ref, w2_ref, o_ref, *, approx_recip=False):
    Bt, N, C = x_ref.shape
    HC = wq_ref.shape[1]                 # H * C (head-major per-head q/k/v width)
    cd = wq_ref.dtype                    # MXU compute dtype (f32 or bf16)

    x = x_ref[...]                       # (Bt, N, C) f32
    slab = slab_ref[...]                 # (6, C): ln1_g, ln1_b, ln2_g, ln2_b, proj_b, fc2_b

    # ---- attention_norm ----
    xn = _layernorm(x, slab[0], slab[1])                   # (Bt, N, C) f32

    # ---- MCrossAttention ----
    # Only token-0 queries are used -> project just those rows (static slice).
    q = jnp.dot(xn[:, 0, :].astype(cd), wq_ref[...],
                preferred_element_type=jnp.float32)        # (Bt, HC)
    xnf = xn.reshape(Bt * N, C)
    kv = jnp.dot(xnf.astype(cd), wkv_ref[...],
                 preferred_element_type=jnp.float32)       # (Bt*N, 2*HC)
    kv = kv.reshape(Bt, N, 2 * HC)
    k = kv[:, :, :HC]                                      # (Bt, N, HC)
    v = kv[:, :, HC:]                                      # (Bt, N, HC)

    # scores s[b,j,h] = <q_bh, k_bjh> * scale  (scale folded into seg matrix).
    # qk products and the segment reduction stay f32 (seg is f32) so nothing is
    # rounded to bf16 before accumulation.
    qk = (q[:, None, :] * k).reshape(Bt * N, HC)           # f32
    s = jnp.dot(qk, seg_ref[...],
                preferred_element_type=jnp.float32).reshape(Bt, N, -1)   # (Bt, N, H)

    # softmax over tokens j (axis=1), per batch & head
    m = jnp.max(s, axis=1, keepdims=True)
    e = jnp.exp(s - m)
    denom = jnp.sum(e, axis=1, keepdims=True)
    p = e * pl.reciprocal(denom, approx=approx_recip)      # (Bt, N, H)

    # per-head weighted sum of V: expand p over each head's C columns (f32 exp
    # helper, no bf16 rounding of softmax weights), reduce over tokens.
    pf = jnp.dot(p.reshape(Bt * N, -1), exp_ref[...],
                 preferred_element_type=jnp.float32).reshape(Bt, N, HC)
    out_flat = jnp.sum(pf * v, axis=1)                     # (Bt, HC)

    attn_out = jnp.dot(out_flat.astype(cd), projw_ref[...],
                       preferred_element_type=jnp.float32) + slab[4]     # (Bt, C)
    # attn_drop / proj_drop: identity (eval)
    x1 = x + attn_out[:, None, :]                          # residual broadcast over tokens

    # ---- ffn_norm + Mlp ----
    xn2 = _layernorm(x1, slab[2], slab[3]).reshape(Bt * N, C)
    hmid = jnp.dot(xn2.astype(cd), w1_ref[...],
                   preferred_element_type=jnp.float32) + b1_ref[...]
    hmid = _gelu_tanh(hmid)
    y = jnp.dot(hmid.astype(cd), w2_ref[...],
                preferred_element_type=jnp.float32) + slab[5]
    o_ref[...] = (x1 + y.reshape(Bt, N, C)).astype(o_ref.dtype)


def prepare_block_params(params, num_heads=NUM_HEADS, compute_dtype=jnp.bfloat16):
    """Build all derived / fused weights ONCE (not per forward call).

    compute_dtype=bf16 (default) halves weight DMA and runs the MXU at full rate
    on v5e/v6e/v7x; LN/softmax/GELU/biases/residuals stay f32 inside the kernel.
    Use compute_dtype=f32 when a ~1e-4 match against an f32 reference is needed.
    """
    C = params["ln1_g"].shape[-1]
    H = num_heads
    hd = C // H
    scale = float(hd) ** -0.5

    eye = jnp.eye(H, dtype=jnp.float32)
    # Block-diagonal per-head projections (head-major (H, C) column blocks,
    # matching the reference's transpose(0,2,1,3).reshape before proj).
    wq_bd = jnp.kron(eye, params["wq_t"]).astype(compute_dtype)                  # (C, H*C)
    wkv_bd = jnp.concatenate(
        [jnp.kron(eye, params["wk_t"]), jnp.kron(eye, params["wv_t"])],
        axis=1).astype(compute_dtype)                                            # (C, 2*H*C)

    # seg: per-head segment sum (H*C, H) with the attention scale folded in; f32.
    seg = jnp.kron(eye, jnp.ones((C, 1), jnp.float32)) * scale
    # exp: per-head broadcast (H, H*C) expanding softmax weights over V columns; f32.
    exp = jnp.kron(eye, jnp.ones((1, C), jnp.float32))

    # Packed slab of all C-wide small params (cuts DMA descriptor count).
    slab = jnp.stack([params["ln1_g"][0], params["ln1_b"][0],
                      params["ln2_g"][0], params["ln2_b"][0],
                      params["proj_b"][0], params["fc2_b"][0]], axis=0).astype(jnp.float32)

    return dict(
        slab=slab,
        wq=wq_bd,
        wkv=wkv_bd,
        seg=seg,
        exp=exp,
        projw=params["proj_t"].astype(compute_dtype),
        w1=params["fc1_t"].astype(compute_dtype),
        b1=params["fc1_b"].astype(jnp.float32),
        w2=params["fc2_t"].astype(compute_dtype),
        # approx softmax reciprocal only in the relaxed bf16 path; keep exact
        # division for the strict f32 reference check.
        approx_recip=bool(np.dtype(compute_dtype) != np.dtype(jnp.float32)),
    )


def _pick_batch_tile(B, N, target_rows=1024, min_grid_steps=1):
    # Fill the MXU M dimension (>=128 rows on v5e, >=256 on v6e/v7x) and amortize
    # the ~0.35us per-step pipeline overhead: take as many batch rows per step as
    # the row budget allows.
    bt = max(1, min(B, target_rows // max(N, 1)))
    # Keep >= min_grid_steps steps so dimension_semantics=("parallel",) can shard
    # the grid across both TensorCores on v7x (set min_grid_steps=2 there).
    bt = min(bt, max(1, B // max(1, min_grid_steps)))
    while B % bt:
        bt -= 1
    return bt


def block_forward(x, prep, *, batch_tile=None, min_grid_steps=1):
    B, N, C = x.shape
    if batch_tile is None:
        batch_tile = _pick_batch_tile(B, N, min_grid_steps=min_grid_steps)
    while B % batch_tile:
        batch_tile -= 1
    grid = (B // batch_tile,)

    weight_keys = ("slab", "wq", "wkv", "seg", "exp", "projw", "w1", "b1", "w2")
    weights = [prep[k] for k in weight_keys]

    def inv(arr):
        # grid-invariant (weights / params) — full-array block, constant index map
        shape = arr.shape
        return pl.BlockSpec(shape, lambda b: (0,) * len(shape))

    in_specs = [pl.BlockSpec((batch_tile, N, C), lambda b: (b, 0, 0))]
    in_specs += [inv(w) for w in weights]

    # Scoped-VMEM estimate: only raise the limit if a large batch_tile would
    # exceed the default scoped VMEM (16 MiB v5e / 32 MiB v6e+); cap at v7x's
    # 64 MiB physical ceiling (the binding constraint across generations).
    io_bytes = 2 * 2 * batch_tile * N * C * 4                       # dbl-buffered in + out tile
    weight_bytes = 2 * sum(int(w.size) * w.dtype.itemsize for w in weights)
    interm_bytes = 12 * batch_tile * N * prep["wq"].shape[1] * 4    # rough activation headroom
    est_bytes = io_bytes + weight_bytes + interm_bytes
    cp_kwargs = dict(dimension_semantics=("parallel",))
    if est_bytes > (16 << 20):
        cp_kwargs["vmem_limit_bytes"] = int(min(max(2 * est_bytes, 32 << 20), 64 << 20))

    kernel = functools.partial(block_kernel, approx_recip=bool(prep["approx_recip"]))

    return pl.pallas_call(
        kernel,
        out_shape=jax.ShapeDtypeStruct((B, N, C), x.dtype),
        grid=grid,
        in_specs=in_specs,
        out_specs=pl.BlockSpec((batch_tile, N, C), lambda b: (b, 0, 0)),
        compiler_params=pltpu.CompilerParams(**cp_kwargs),
    )(x, *weights)


def block_reference(x, params):
    """Pure-JAX reference mirroring the PyTorch forward exactly (eval mode)."""
    B, N, C = x.shape
    H = NUM_HEADS
    hd = C // H
    scale = float(hd) ** -0.5

    xn = _layernorm(x, params["ln1_g"][0], params["ln1_b"][0])
    q = jnp.matmul(xn[:, 0:1, :].reshape(B, 1, H, hd), params["wq_t"]).transpose(0, 2, 1, 3)
    k = jnp.matmul(xn.reshape(B, N, H, hd), params["wk_t"]).transpose(0, 2, 1, 3)
    v = jnp.matmul(xn.reshape(B, N, H, hd), params["wv_t"]).transpose(0, 2, 1, 3)
    attn = jnp.einsum('bhid,bhjd->bhij', q, k) * scale
    attn = jax.nn.softmax(attn, axis=-1)
    o = jnp.einsum('bhij,bhjd->bhid', attn, v).transpose(0, 2, 1, 3).reshape(B, 1, C * H)
    o = o @ params["proj_t"] + params["proj_b"][0]
    x1 = x + o

    xn2 = _layernorm(x1, params["ln2_g"][0], params["ln2_b"][0])
    y = _gelu_tanh(xn2 @ params["fc1_t"] + params["fc1_b"][0])
    y = y @ params["fc2_t"] + params["fc2_b"][0]
    return x1 + y


def init_params(key, dim):
    H = NUM_HEADS
    hd = dim // H
    ks = jax.random.split(key, 8)

    def xavier(k, shape):
        fan_in, fan_out = shape
        lim = (6.0 / (fan_in + fan_out)) ** 0.5
        return jax.random.uniform(k, shape, jnp.float32, -lim, lim)

    return dict(
        ln1_g=jnp.ones((1, dim), jnp.float32),
        ln1_b=jnp.zeros((1, dim), jnp.float32),
        wq_t=xavier(ks[0], (hd, dim)),
        wk_t=xavier(ks[1], (hd, dim)),
        wv_t=xavier(ks[2], (hd, dim)),
        proj_t=xavier(ks[3], (dim * H, dim)),
        proj_b=jnp.zeros((1, dim), jnp.float32),
        ln2_g=jnp.ones((1, dim), jnp.float32),
        ln2_b=jnp.zeros((1, dim), jnp.float32),
        fc1_t=xavier(ks[4], (dim, MLP_HIDDEN)),
        fc1_b=(1e-6 * jax.random.normal(ks[5], (1, MLP_HIDDEN))).astype(jnp.float32),
        fc2_t=xavier(ks[6], (MLP_HIDDEN, dim)),
        fc2_b=(1e-6 * jax.random.normal(ks[7], (1, dim))).astype(jnp.float32),
    )


if __name__ == "__main__":
    key = jax.random.PRNGKey(0)
    kx, kp = jax.random.split(key)
    B, N, dim = 2, 8, 32          # dim must be divisible by num_heads=8
    x = jax.random.normal(kx, (B, N, dim), jnp.float32)
    params = init_params(kp, dim)
    ref = block_reference(x, params)

    # f32 weights: strict numerical check against the reference.
    prep_f32 = prepare_block_params(params, compute_dtype=jnp.float32)
    out_f32 = jax.block_until_ready(block_forward(x, prep_f32))
    assert out_f32.shape == (B, N, dim)
    err32 = float(jnp.max(jnp.abs(out_f32 - ref)))
    assert jnp.allclose(out_f32, ref, atol=1e-4, rtol=1e-4), err32

    # bf16 MXU weights (perf default): halves weight DMA, full MXU rate on
    # v5e/v6e/v7x; relaxed tolerance per the perf review.
    prep_bf16 = prepare_block_params(params, compute_dtype=jnp.bfloat16)
    out_bf16 = jax.block_until_ready(block_forward(x, prep_bf16))
    assert out_bf16.shape == (B, N, dim)
    err16 = float(jnp.max(jnp.abs(out_bf16 - ref)))
    assert jnp.allclose(out_bf16, ref, atol=2e-2, rtol=2e-2), err16

    print("KERNEL_OK")
</pallas_src>

<mosaic_0001>
module attributes {stable_mosaic.version = 11 : i64} {
  func.func @block_kernel(%arg0: i32, %arg1: memref<2x8x32xf32, #tpu.memory_space<vmem>>, %arg2: memref<6x32xf32, #tpu.memory_space<vmem>>, %arg3: memref<32x256xf32, #tpu.memory_space<vmem>>, %arg4: memref<32x512xf32, #tpu.memory_space<vmem>>, %arg5: memref<256x8xf32, #tpu.memory_space<vmem>>, %arg6: memref<8x256xf32, #tpu.memory_space<vmem>>, %arg7: memref<256x32xf32, #tpu.memory_space<vmem>>, %arg8: memref<32x512xf32, #tpu.memory_space<vmem>>, %arg9: memref<1x512xf32, #tpu.memory_space<vmem>>, %arg10: memref<512x32xf32, #tpu.memory_space<vmem>>, %arg11: memref<2x8x32xf32, #tpu.memory_space<vmem>>) attributes {dimension_semantics = [#tpu.dimension_semantics<parallel>], iteration_bounds = array<i64: 1>, scalar_prefetch = 0 : i64, scratch_operands = 0 : i64, tpu.core_type = #tpu.core_type<tc>, window_params = [{transform_indices = @transform_0, window_bounds = array<i64: 2, 8, 32>}, {pipeline_mode = #tpu.pipeline_mode<synchronous>, transform_indices = @transform_1, window_bounds = array<i64: 6, 32>}, {pipeline_mode = #tpu.pipeline_mode<synchronous>, transform_indices = @transform_2, window_bounds = array<i64: 32, 256>}, {pipeline_mode = #tpu.pipeline_mode<synchronous>, transform_indices = @transform_3, window_bounds = array<i64: 32, 512>}, {pipeline_mode = #tpu.pipeline_mode<synchronous>, transform_indices = @transform_4, window_bounds = array<i64: 256, 8>}, {pipeline_mode = #tpu.pipeline_mode<synchronous>, transform_indices = @transform_5, window_bounds = array<i64: 8, 256>}, {pipeline_mode = #tpu.pipeline_mode<synchronous>, transform_indices = @transform_6, window_bounds = array<i64: 256, 32>}, {pipeline_mode = #tpu.pipeline_mode<synchronous>, transform_indices = @transform_7, window_bounds = array<i64: 32, 512>}, {pipeline_mode = #tpu.pipeline_mode<synchronous>, transform_indices = @transform_8, window_bounds = array<i64: 1, 512>}, {pipeline_mode = #tpu.pipeline_mode<synchronous>, transform_indices = @transform_9, window_bounds = array<i64: 512, 32>}, {transform_indices = @transform_10, window_bounds = array<i64: 2, 8, 32>}]} {
    %c0 = arith.constant 0 : index
    %c0_0 = arith.constant 0 : index
    %c0_1 = arith.constant 0 : index
    %0 = vector.load %arg1[%c0, %c0_0, %c0_1] : memref<2x8x32xf32, #tpu.memory_space<vmem>>, vector<2x8x32xf32>
    %c0_2 = arith.constant 0 : index
    %c0_3 = arith.constant 0 : index
    %1 = vector.load %arg2[%c0_2, %c0_3] : memref<6x32xf32, #tpu.memory_space<vmem>>, vector<6x32xf32>
    %2 = vector.extract_strided_slice %1 {offsets = [0, 0], sizes = [1, 32], strides = [1, 1]} : vector<6x32xf32> to vector<1x32xf32>
    %3 = vector.shape_cast %2 : vector<1x32xf32> to vector<32xf32>
    %4 = vector.extract_strided_slice %1 {offsets = [1, 0], sizes = [1, 32], strides = [1, 1]} : vector<6x32xf32> to vector<1x32xf32>
    %5 = vector.shape_cast %4 : vector<1x32xf32> to vector<32xf32>
    %cst = arith.constant dense<0.000000e+00> : vector<2x8xf32>
    %6 = vector.multi_reduction <add>, %0, %cst [2] : vector<2x8x32xf32> to vector<2x8xf32>
    %7 = vector.shape_cast %6 : vector<2x8xf32> to vector<2x8x1xf32>
    %cst_4 = arith.constant 3.200000e+01 : f32
    %8 = vector.broadcast %cst_4 : f32 to vector<2x8x1xf32>
    %9 = arith.divf %7, %8 : vector<2x8x1xf32>
    %10 = vector.broadcast %9 : vector<2x8x1xf32> to vector<2x8x32xf32>
    %11 = arith.subf %0, %10 : vector<2x8x32xf32>
    %12 = arith.mulf %11, %11 : vector<2x8x32xf32>
    %cst_5 = arith.constant dense<0.000000e+00> : vector<2x8xf32>
    %13 = vector.multi_reduction <add>, %12, %cst_5 [2] : vector<2x8x32xf32> to vector<2x8xf32>
    %14 = vector.shape_cast %13 : vector<2x8xf32> to vector<2x8x1xf32>
    %cst_6 = arith.constant 3.200000e+01 : f32
    %15 = vector.broadcast %cst_6 : f32 to vector<2x8x1xf32>
    %16 = arith.divf %14, %15 : vector<2x8x1xf32>
    %17 = vector.broadcast %9 : vector<2x8x1xf32> to vector<2x8x32xf32>
    %18 = arith.subf %0, %17 : vector<2x8x32xf32>
    %cst_7 = arith.constant 9.99999997E-7 : f32
    %19 = vector.broadcast %cst_7 : f32 to vector<2x8x1xf32>
    %20 = arith.addf %16, %19 : vector<2x8x1xf32>
    %21 = math.rsqrt %20 : vector<2x8x1xf32>
    %22 = vector.broadcast %21 : vector<2x8x1xf32> to vector<2x8x32xf32>
    %23 = arith.mulf %18, %22 : vector<2x8x32xf32>
    %24 = vector.shape_cast %3 : vector<32xf32> to vector<1x1x32xf32>
    %25 = vector.broadcast %24 : vector<1x1x32xf32> to vector<2x8x32xf32>
    %26 = arith.mulf %23, %25 : vector<2x8x32xf32>
    %27 = vector.shape_cast %5 : vector<32xf32> to vector<1x1x32xf32>
    %28 = vector.broadcast %27 : vector<1x1x32xf32> to vector<2x8x32xf32>
    %29 = arith.addf %26, %28 : vector<2x8x32xf32>
    %30 = vector.extract_strided_slice %29 {offsets = [0, 0, 0], sizes = [2, 1, 32], strides = [1, 1, 1]} : vector<2x8x32xf32> to vector<2x1x32xf32>
    %31 = vector.shape_cast %30 : vector<2x1x32xf32> to vector<2x32xf32>
    %c0_8 = arith.constant 0 : index
    %c0_9 = arith.constant 0 : index
    %32 = vector.load %arg3[%c0_8, %c0_9] : memref<32x256xf32, #tpu.memory_space<vmem>>, vector<32x256xf32>
    %cst_10 = arith.constant dense<0.000000e+00> : vector<2x256xf32>
    %33 = tpu.matmul %31, %32, %cst_10 {dimension_numbers = #tpu.dot_dimension_numbers<[1], [0], [0], [1], [0, 0, 1, 1], [], []>} : vector<2x32xf32>, vector<32x256xf32>, vector<2x256xf32> -> vector<2x256xf32>
    %34 = vector.shape_cast %29 : vector<2x8x32xf32> to vector<16x32xf32>
    %c0_11 = arith.constant 0 : index
    %c0_12 = arith.constant 0 : index
    %35 = vector.load %arg4[%c0_11, %c0_12] : memref<32x512xf32, #tpu.memory_space<vmem>>, vector<32x512xf32>
    %cst_13 = arith.constant dense<0.000000e+00> : vector<16x512xf32>
    %36 = tpu.matmul %34, %35, %cst_13 {dimension_numbers = #tpu.dot_dimension_numbers<[1], [0], [0], [1], [0, 0, 1, 1], [], []>} : vector<16x32xf32>, vector<32x512xf32>, vector<16x512xf32> -> vector<16x512xf32>
    %37 = vector.shape_cast %36 : vector<16x512xf32> to vector<2x8x512xf32>
    %38 = vector.extract_strided_slice %37 {offsets = [0, 0, 0], sizes = [2, 8, 256], strides = [1, 1, 1]} : vector<2x8x512xf32> to vector<2x8x256xf32>
    %39 = vector.extract_strided_slice %37 {offsets = [0, 0, 256], sizes = [2, 8, 256], strides = [1, 1, 1]} : vector<2x8x512xf32> to vector<2x8x256xf32>
    %40 = vector.shape_cast %33 : vector<2x256xf32> to vector<2x1x256xf32>
    %41 = vector.broadcast %40 : vector<2x1x256xf32> to vector<2x8x256xf32>
    %42 = arith.mulf %41, %38 : vector<2x8x256xf32>
    %43 = vector.shape_cast %42 : vector<2x8x256xf32> to vector<16x256xf32>
    %c0_14 = arith.constant 0 : index
    %c0_15 = arith.constant 0 : index
    %44 = vector.load %arg5[%c0_14, %c0_15] : memref<256x8xf32, #tpu.memory_space<vmem>>, vector<256x8xf32>
    %cst_16 = arith.constant dense<0.000000e+00> : vector<16x8xf32>
    %45 = tpu.matmul %43, %44, %cst_16 {dimension_numbers = #tpu.dot_dimension_numbers<[1], [0], [0], [1], [0, 0, 1, 1], [], []>} : vector<16x256xf32>, vector<256x8xf32>, vector<16x8xf32> -> vector<16x8xf32>
    %46 = vector.shape_cast %45 : vector<16x8xf32> to vector<2x8x8xf32>
    %cst_17 = arith.constant dense<0xFF800000> : vector<2x8xf32>
    %47 = vector.multi_reduction <maximumf>, %46, %cst_17 [1] : vector<2x8x8xf32> to vector<2x8xf32>
    %48 = vector.shape_cast %47 : vector<2x8xf32> to vector<2x1x8xf32>
    %49 = vector.broadcast %48 : vector<2x1x8xf32> to vector<2x8x8xf32>
    %50 = arith.subf %46, %49 : vector<2x8x8xf32>
    %51 = math.exp %50 : vector<2x8x8xf32>
    %cst_18 = arith.constant dense<0.000000e+00> : vector<2x8xf32>
    %52 = vector.multi_reduction <add>, %51, %cst_18 [1] : vector<2x8x8xf32> to vector<2x8xf32>
    %53 = vector.shape_cast %52 : vector<2x8xf32> to vector<2x1x8xf32>
    %54 = tpu.reciprocal %53 : vector<2x1x8xf32> -> vector<2x1x8xf32>
    %55 = vector.broadcast %54 : vector<2x1x8xf32> to vector<2x8x8xf32>
    %56 = arith.mulf %51, %55 : vector<2x8x8xf32>
    %57 = vector.shape_cast %56 : vector<2x8x8xf32> to vector<16x8xf32>
    %c0_19 = arith.constant 0 : index
    %c0_20 = arith.constant 0 : index
    %58 = vector.load %arg6[%c0_19, %c0_20] : memref<8x256xf32, #tpu.memory_space<vmem>>, vector<8x256xf32>
    %cst_21 = arith.constant dense<0.000000e+00> : vector<16x256xf32>
    %59 = tpu.matmul %57, %58, %cst_21 {dimension_numbers = #tpu.dot_dimension_numbers<[1], [0], [0], [1], [0, 0, 1, 1], [], []>} : vector<16x8xf32>, vector<8x256xf32>, vector<16x256xf32> -> vector<16x256xf32>
    %60 = vector.shape_cast %59 : vector<16x256xf32> to vector<2x8x256xf32>
    %61 = arith.mulf %60, %39 : vector<2x8x256xf32>
    %cst_22 = arith.constant dense<0.000000e+00> : vector<2x256xf32>
    %62 = vector.multi_reduction <add>, %61, %cst_22 [1] : vector<2x8x256xf32> to vector<2x256xf32>
    %c0_23 = arith.constant 0 : index
    %c0_24 = arith.constant 0 : index
    %63 = vector.load %arg7[%c0_23, %c0_24] : memref<256x32xf32, #tpu.memory_space<vmem>>, vector<256x32xf32>
    %cst_25 = arith.constant dense<0.000000e+00> : vector<2x32xf32>
    %64 = tpu.matmul %62, %63, %cst_25 {dimension_numbers = #tpu.dot_dimension_numbers<[1], [0], [0], [1], [0, 0, 1, 1], [], []>} : vector<2x256xf32>, vector<256x32xf32>, vector<2x32xf32> -> vector<2x32xf32>
    %65 = vector.extract_strided_slice %1 {offsets = [4, 0], sizes = [1, 32], strides = [1, 1]} : vector<6x32xf32> to vector<1x32xf32>
    %66 = vector.shape_cast %65 : vector<1x32xf32> to vector<32xf32>
    %67 = vector.shape_cast %66 : vector<32xf32> to vector<1x32xf32>
    %68 = vector.broadcast %67 : vector<1x32xf32> to vector<2x32xf32>
    %69 = arith.addf %64, %68 : vector<2x32xf32>
    %70 = vector.shape_cast %69 : vector<2x32xf32> to vector<2x1x32xf32>
    %71 = vector.broadcast %70 : vector<2x1x32xf32> to vector<2x8x32xf32>
    %72 = arith.addf %0, %71 : vector<2x8x32xf32>
    %73 = vector.extract_strided_slice %1 {offsets = [2, 0], sizes = [1, 32], strides = [1, 1]} : vector<6x32xf32> to vector<1x32xf32>
    %74 = vector.shape_cast %73 : vector<1x32xf32> to vector<32xf32>
    %75 = vector.extract_strided_slice %1 {offsets = [3, 0], sizes = [1, 32], strides = [1, 1]} : vector<6x32xf32> to vector<1x32xf32>
    %76 = vector.shape_cast %75 : vector<1x32xf32> to vector<32xf32>
    %cst_26 = arith.constant dense<0.000000e+00> : vector<2x8xf32>
    %77 = vector.multi_reduction <add>, %72, %cst_26 [2] : vector<2x8x32xf32> to vector<2x8xf32>
    %78 = vector.shape_cast %77 : vector<2x8xf32> to vector<2x8x1xf32>
    %cst_27 = arith.constant 3.200000e+01 : f32
    %79 = vector.broadcast %cst_27 : f32 to vector<2x8x1xf32>
    %80 = arith.divf %78, %79 : vector<2x8x1xf32>
    %81 = vector.broadcast %80 : vector<2x8x1xf32> to vector<2x8x32xf32>
    %82 = arith.subf %72, %81 : vector<2x8x32xf32>
    %83 = arith.mulf %82, %82 : vector<2x8x32xf32>
    %cst_28 = arith.constant dense<0.000000e+00> : vector<2x8xf32>
    %84 = vector.multi_reduction <add>, %83, %cst_28 [2] : vector<2x8x32xf32> to vector<2x8xf32>
    %85 = vector.shape_cast %84 : vector<2x8xf32> to vector<2x8x1xf32>
    %cst_29 = arith.constant 3.200000e+01 : f32
    %86 = vector.broadcast %cst_29 : f32 to vector<2x8x1xf32>
    %87 = arith.divf %85, %86 : vector<2x8x1xf32>
    %88 = vector.broadcast %80 : vector<2x8x1xf32> to vector<2x8x32xf32>
    %89 = arith.subf %72, %88 : vector<2x8x32xf32>
    %cst_30 = arith.constant 9.99999997E-7 : f32
    %90 = vector.broadcast %cst_30 : f32 to vector<2x8x1xf32>
    %91 = arith.addf %87, %90 : vector<2x8x1xf32>
    %92 = math.rsqrt %91 : vector<2x8x1xf32>
    %93 = vector.broadcast %92 : vector<2x8x1xf32> to vector<2x8x32xf32>
    %94 = arith.mulf %89, %93 : vector<2x8x32xf32>
    %95 = vector.shape_cast %74 : vector<32xf32> to vector<1x1x32xf32>
    %96 = vector.broadcast %95 : vector<1x1x32xf32> to vector<2x8x32xf32>
    %97 = arith.mulf %94, %96 : vector<2x8x32xf32>
    %98 = vector.shape_cast %76 : vector<32xf32> to vector<1x1x32xf32>
    %99 = vector.broadcast %98 : vector<1x1x32xf32> to vector<2x8x32xf32>
    %100 = arith.addf %97, %99 : vector<2x8x32xf32>
    %101 = vector.shape_cast %100 : vector<2x8x32xf32> to vector<16x32xf32>
    %c0_31 = arith.constant 0 : index
    %c0_32 = arith.constant 0 : index
    %102 = vector.load %arg8[%c0_31, %c0_32] : memref<32x512xf32, #tpu.memory_space<vmem>>, vector<32x512xf32>
    %cst_33 = arith.constant dense<0.000000e+00> : vector<16x512xf32>
    %103 = tpu.matmul %101, %102, %cst_33 {dimension_numbers = #tpu.dot_dimension_numbers<[1], [0], [0], [1], [0, 0, 1, 1], [], []>} : vector<16x32xf32>, vector<32x512xf32>, vector<16x512xf32> -> vector<16x512xf32>
    %c0_34 = arith.constant 0 : index
    %c0_35 = arith.constant 0 : index
    %104 = vector.load %arg9[%c0_34, %c0_35] : memref<1x512xf32, #tpu.memory_space<vmem>>, vector<1x512xf32>
    %105 = vector.broadcast %104 : vector<1x512xf32> to vector<16x512xf32>
    %106 = arith.addf %103, %105 : vector<16x512xf32>
    %cst_36 = arith.constant 0.636619746 : f32
    %107 = math.sqrt %cst_36 : f32
    %cst_37 = arith.constant 5.000000e-01 : f32
    %108 = vector.broadcast %cst_37 : f32 to vector<16x512xf32>
    %109 = arith.mulf %108, %106 : vector<16x512xf32>
    %cst_38 = arith.constant 4.471500e-02 : f32
    %110 = vector.broadcast %cst_38 : f32 to vector<16x512xf32>
    %111 = arith.mulf %110, %106 : vector<16x512xf32>
    %112 = arith.mulf %111, %106 : vector<16x512xf32>
    %113 = arith.mulf %112, %106 : vector<16x512xf32>
    %114 = arith.addf %106, %113 : vector<16x512xf32>
    %115 = vector.broadcast %107 : f32 to vector<16x512xf32>
    %116 = arith.mulf %115, %114 : vector<16x512xf32>
    %117 = math.tanh %116 : vector<16x512xf32>
    %cst_39 = arith.constant 1.000000e+00 : f32
    %118 = vector.broadcast %cst_39 : f32 to vector<16x512xf32>
    %119 = arith.addf %118, %117 : vector<16x512xf32>
    %120 = arith.mulf %109, %119 : vector<16x512xf32>
    %c0_40 = arith.constant 0 : index
    %c0_41 = arith.constant 0 : index
    %121 = vector.load %arg10[%c0_40, %c0_41] : memref<512x32xf32, #tpu.memory_space<vmem>>, vector<512x32xf32>
    %cst_42 = arith.constant dense<0.000000e+00> : vector<16x32xf32>
    %122 = tpu.matmul %120, %121, %cst_42 {dimension_numbers = #tpu.dot_dimension_numbers<[1], [0], [0], [1], [0, 0, 1, 1], [], []>} : vector<16x512xf32>, vector<512x32xf32>, vector<16x32xf32> -> vector<16x32xf32>
    %123 = vector.extract_strided_slice %1 {offsets = [5, 0], sizes = [1, 32], strides = [1, 1]} : vector<6x32xf32> to vector<1x32xf32>
    %124 = vector.shape_cast %123 : vector<1x32xf32> to vector<32xf32>
    %125 = vector.shape_cast %124 : vector<32xf32> to vector<1x32xf32>
    %126 = vector.broadcast %125 : vector<1x32xf32> to vector<16x32xf32>
    %127 = arith.addf %122, %126 : vector<16x32xf32>
    %128 = vector.shape_cast %127 : vector<16x32xf32> to vector<2x8x32xf32>
    %129 = arith.addf %72, %128 : vector<2x8x32xf32>
    %c0_43 = arith.constant 0 : index
    %c0_44 = arith.constant 0 : index
    %c0_45 = arith.constant 0 : index
    %130 = vector.load %arg11[%c0_43, %c0_44, %c0_45] : memref<2x8x32xf32, #tpu.memory_space<vmem>>, vector<2x8x32xf32>
    tpu.vector_store %arg11[%c0_43, %c0_44, %c0_45], %129 {strides = array<i32>} : memref<2x8x32xf32, #tpu.memory_space<vmem>>, vector<2x8x32xf32>,
    return
  }
  func.func @transform_0(%arg0: i32) -> (i32, i32, i32) {
    %c0_i32 = arith.constant 0 : i32
    %c0_i32_0 = arith.constant 0 : i32
    %c0_i32_1 = arith.constant 0 : i32
    return %arg0, %c0_i32, %c0_i32_0 : i32, i32, i32
  }
  func.func @transform_1(%arg0: i32) -> (i32, i32) {
    %c0_i32 = arith.constant 0 : i32
    %c0_i32_0 = arith.constant 0 : i32
    %c0_i32_1 = arith.constant 0 : i32
    return %c0_i32, %c0_i32_0 : i32, i32
  }
  func.func @transform_2(%arg0: i32) -> (i32, i32) {
    %c0_i32 = arith.constant 0 : i32
    %c0_i32_0 = arith.constant 0 : i32
    %c0_i32_1 = arith.constant 0 : i32
    return %c0_i32, %c0_i32_0 : i32, i32
  }
  func.func @transform_3(%arg0: i32) -> (i32, i32) {
    %c0_i32 = arith.constant 0 : i32
    %c0_i32_0 = arith.constant 0 : i32
    %c0_i32_1 = arith.constant 0 : i32
    return %c0_i32, %c0_i32_0 : i32, i32
  }
  func.func @transform_4(%arg0: i32) -> (i32, i32) {
    %c0_i32 = arith.constant 0 : i32
    %c0_i32_0 = arith.constant 0 : i32
    %c0_i32_1 = arith.constant 0 : i32
    return %c0_i32, %c0_i32_0 : i32, i32
  }
  func.func @transform_5(%arg0: i32) -> (i32, i32) {
    %c0_i32 = arith.constant 0 : i32
    %c0_i32_0 = arith.constant 0 : i32
    %c0_i32_1 = arith.constant 0 : i32
    return %c0_i32, %c0_i32_0 : i32, i32
  }
  func.func @transform_6(%arg0: i32) -> (i32, i32) {
    %c0_i32 = arith.constant 0 : i32
    %c0_i32_0 = arith.constant 0 : i32
    %c0_i32_1 = arith.constant 0 : i32
    return %c0_i32, %c0_i32_0 : i32, i32
  }
  func.func @transform_7(%arg0: i32) -> (i32, i32) {
    %c0_i32 = arith.constant 0 : i32
    %c0_i32_0 = arith.constant 0 : i32
    %c0_i32_1 = arith.constant 0 : i32
    return %c0_i32, %c0_i32_0 : i32, i32
  }
  func.func @transform_8(%arg0: i32) -> (i32, i32) {
    %c0_i32 = arith.constant 0 : i32
    %c0_i32_0 = arith.constant 0 : i32
    %c0_i32_1 = arith.constant 0 : i32
    return %c0_i32, %c0_i32_0 : i32, i32
  }
  func.func @transform_9(%arg0: i32) -> (i32, i32) {
    %c0_i32 = arith.constant 0 : i32
    %c0_i32_0 = arith.constant 0 : i32
    %c0_i32_1 = arith.constant 0 : i32
    return %c0_i32, %c0_i32_0 : i32, i32
  }
  func.func @transform_10(%arg0: i32) -> (i32, i32, i32) {
    %c0_i32 = arith.constant 0 : i32
    %c0_i32_0 = arith.constant 0 : i32
    %c0_i32_1 = arith.constant 0 : i32
    return %arg0, %c0_i32, %c0_i32_0 : i32, i32, i32
  }
}

</mosaic_0001>

<bundles_post_ra>
// kernel: tpu_custom_call.1
= control target key start
LH: loop header
LB: loop body
LE: loop exit
PB: predicated region body
PF: predicated region fallthrough
CT: control target
= control target key end

     0   :  { %vm39_vm0 = vcmask 261120   ;;  %s2505_s0 = inlined_call_operand.vmem [shape: f32[2,8,32], index: 0, kind: input, shape index: {}]   ;;  %s2506_s1 = inlined_call_operand.vmem [shape: f32[6,32], index: 1, kind: input, shape index: {}]   ;;  %s2507_s2 = inlined_call_operand.vmem [shape: f32[32,256], index: 2, kind: input, shape index: {}]   ;;  %s2508_s3 = inlined_call_operand.vmem [shape: f32[32,512], index: 3, kind: input, shape index: {}]   ;;  %s2509_s4 = inlined_call_operand.vmem [shape: f32[256,8], index: 4, kind: input, shape index: {}]   ;;  %s2510_s5 = inlined_call_operand.vmem [shape: f32[8,256], index: 5, kind: input, shape index: {}]   ;;  %s2511_s6 = inlined_call_operand.vmem [shape: f32[256,32], index: 6, kind: input, shape index: {}]   ;;  %s2512_s7 = inlined_call_operand.vmem [shape: f32[32,512], index: 7, kind: input, shape index: {}]   ;;  %s2513_s8 = inlined_call_operand.vmem [shape: f32[1,512], index: 8, kind: input, shape index: {}]   ;;  %s2514_s9 = inlined_call_operand.vmem [shape: f32[512,32], index: 9, kind: input, shape index: {}]   ;;  %s2515_s10 = inlined_call_operand.hbm [shape: f32[2,8,32], index: 10, kind: output, shape index: {}]  }
   0x1   :  { %v1795_v0 = vld [vmem:[%s2505_s0 + $0x8] sm:$0xff]  ;;  %v1800_v1 = vld [vmem:[%s2505_s0] sm:$0xff] }
   0x2   :  { %15 = vsyncpa [#allocation3], 0  ;;  %v43_v2 = vsel %vm39_vm0, %v1795_v0, 0.0  ;;  %v40_v3 = vsel %vm39_vm0, %v1800_v1, 0.0  ;;  %v80_v14 = vld [vmem:[%s2507_s2 + $0x8] sm:$0xff]  ;;  %v82_v15 = vld [vmem:[%s2507_s2 + $0x18] sm:$0xff]  ;;  %v67_v47 = vlaneseq }
   0x3   :  { %44 = vadd.xlane.f32.xlu0 %v43_v2  ;;  %v166_v16 = vld [vmem:[%s2508_s3 + $0x8] sm:$0xff]  ;;  %v1502_v17 = vpack.c.bf16 %v82_v15, %v80_v14  ;;  %v79_v19 = vld [vmem:[%s2507_s2] sm:$0xff]  ;;  %v81_v20 = vld [vmem:[%s2507_s2 + $0x10] sm:$0xff]  ;;  %v1732_v26 = vmov 0.0   ;;  %vm90_vm1 = vcmask 1041409   ;;  %vm495_vm2 = vcmask 64512  }
   0x4   :  { %v170_v18 = vld [vmem:[%s2508_s3 + $0x28] sm:$0xff]  ;;  %v1504_v22 = vpack.c.bf16 %v81_v20, %v79_v19  ;;  %v165_v23 = vld [vmem:[%s2508_s3] sm:$0xff]  ;;  %249 = vmatprep.mubr.f32.mxu1 %v1732_v26  ;;  %158 = vmatprep.mubr.f32.mxu0 %v1732_v26  ;;  %v86_v28 = vld [vmem:[%s2507_s2 + $0x38] sm:$0xff]  ;;  %v1880_v51 = vshrl.u32 %v67_v47, 7  ;;  %s1734_s13 = smov [#allocation2]  }
   0x5   :  { %v1510_v21 = vpack.c.bf16 %v170_v18, %v166_v16  ;;  %v169_v24 = vld [vmem:[%s2508_s3 + $0x20] sm:$0xff]  ;;  %v84_v25 = vld [vmem:[%s2507_s2 + $0x28] sm:$0xff]  ;;  %1503 = vmatprep.subr.bf16.mxu0 %v1502_v17  ;;  %v85_v34 = vld [vmem:[%s2507_s2 + $0x30] sm:$0xff]  ;;  %s1331_s14 = sshll.u32 %s1734_s13, 4  ;;  %s1332_s14 = int_to_ptr.vmem [resolvable:$true] %s1331_s14 }
   0x6   :  { %v1512_v27 = vpack.c.bf16 %v169_v24, %v165_v23  ;;  %v174_v29 = vld [vmem:[%s2508_s3 + $0x48] sm:$0xff]  ;;  %1505 = vmatpush1.bf16.msra.mxu0 %v1504_v22  ;;  %v1506_v31 = vpack.c.bf16 %v86_v28, %v84_v25  ;;  %v83_v33 = vld [vmem:[%s2507_s2 + $0x20] sm:$0xff]  ;;  %v168_v39 = vld [vmem:[%s2508_s3 + $0x18] sm:$0xff]  ;;  %v1883_v53 = vsub.s32 0, %v1880_v51  ;;  %v1891_v55 = vsub.s32 1, %v1880_v51  ;;  %p1713_p1 = scmp.lt.s32.totalorder %s1332_s14, %s1332_s14 }
   0x7   :  { %41 = vadd.xlane.f32.xlu0 %v40_v3  ;;  %v178_v30 = vld [vmem:[%s2508_s3 + $0x68] sm:$0xff]  ;;  %1511 = vmatprep.subr.bf16.mxu1 %v1510_v21  ;;  %v173_v35 = vld [vmem:[%s2508_s3 + $0x40] sm:$0xff]  ;;  %v1508_v36 = vpack.c.bf16 %v85_v34, %v83_v33  ;;  %v172_v40 = vld [vmem:[%s2508_s3 + $0x38] sm:$0xff] }
   0x8   :  { %v1514_v32 = vpack.c.bf16 %v178_v30, %v174_v29  ;;  %1513 = vmatpush1.bf16.msra.mxu1 %v1512_v27  ;;  %v177_v37 = vld [vmem:[%s2508_s3 + $0x60] sm:$0xff]  ;;  %1507 = vmatprep.subr.bf16.mxu0 %v1506_v31  ;;  %v1518_v41 = vpack.c.bf16 %v172_v40, %v168_v39  ;;  %v405_v43 = vld [vmem:[%s2509_s4 + $0x88] sm:$0xff]  ;;  %v167_v2 = vld [vmem:[%s2508_s3 + $0x10] sm:$0xff] }
   0x9   :  { %v1516_v38 = vpack.c.bf16 %v177_v37, %v173_v35  ;;  %v404_v42 = vld [vmem:[%s2509_s4 + $0x80] sm:$0xff]  ;;  %v171_v3 = vld [vmem:[%s2508_s3 + $0x30] sm:$0xff]  ;;  %v391_v21 = vld [vmem:[%s2509_s4 + $0x18] sm:$0xff] }
   0xa   :  { %1515 = vmatprep.subr.bf16.mxu1 %v1514_v32  ;;  %1509 = vmatpush1.bf16.msra.mxu0 %v1508_v36  ;;  %v1526_v44 = vpack.c.bf16 %v405_v43, %v404_v42  ;;  %v1888_v54 = vld [vmem:[%s2506_s1] sm:$0x3f]  ;;  %v175_v15 = vld [vmem:[%s2508_s3 + $0x50] sm:$0xff]  ;;  %v409_v23 = vld [vmem:[%s2509_s4 + $0xa8] sm:$0xff] }
   0xb   :  { %1519 = vmatprep.subr.bf16.mxu0 %v1518_v41  ;;  %v70_v56 = vrot.slane %v1888_v54, %v1883_v53  ;;  %v76_v59 = vrot.slane %v1888_v54, %v1891_v55  ;;  %v179_v16 = vld [vmem:[%s2508_s3 + $0x70] sm:$0xff]  ;;  %v408_v22 = vld [vmem:[%s2509_s4 + $0xa0] sm:$0xff]  ;;  %v393_v29 = vld [vmem:[%s2509_s4 + $0x28] sm:$0xff] }
   0xc   :  { %1517 = vmatpush1.bf16.msra.mxu1 %v1516_v38  ;;  %v390_v20 = vld [vmem:[%s2509_s4 + $0x10] sm:$0xff]  ;;  %v1524_v24 = vpack.c.bf16 %v179_v16, %v175_v15  ;;  %v1534_v27 = vpack.c.bf16 %v409_v23, %v408_v22  ;;  %v392_v28 = vld [vmem:[%s2509_s4 + $0x20] sm:$0xff]  ;;  %v411_v31 = vld [vmem:[%s2509_s4 + $0xb8] sm:$0xff] }
   0xd   :  { %1527 = vmatprep.subr.bf16.mxu1 %v1526_v44  ;;  %v1532_v25 = vpack.c.bf16 %v391_v21, %v390_v20  ;;  %v410_v30 = vld [vmem:[%s2509_s4 + $0xb0] sm:$0xff]  ;;  %v1536_v32 = vpack.c.bf16 %v393_v29, %v392_v28  ;;  %v395_v35 = vld [vmem:[%s2509_s4 + $0x38] sm:$0xff]  ;;  %v412_v36 = vld [vmem:[%s2509_s4 + $0xc0] sm:$0xff] }
   0xe   :  { %v1538_v33 = vpack.c.bf16 %v411_v31, %v410_v30  ;;  %v394_v34 = vld [vmem:[%s2509_s4 + $0x30] sm:$0xff]  ;;  %v413_v37 = vld [vmem:[%s2509_s4 + $0xc8] sm:$0xff]  ;;  %v396_v40 = vld [vmem:[%s2509_s4 + $0x40] sm:$0xff] }
   0xf   :  { %v1540_v38 = vpack.c.bf16 %v395_v35, %v394_v34  ;;  %v1542_v39 = vpack.c.bf16 %v413_v37, %v412_v36  ;;  %v397_v41 = vld [vmem:[%s2509_s4 + $0x48] sm:$0xff]  ;;  %v414_v43 = vld [vmem:[%s2509_s4 + $0xd0] sm:$0xff]  ;;  %v415_v44 = vld [vmem:[%s2509_s4 + $0xd8] sm:$0xff] }
  0x10   :  { %v1544_v42 = vpack.c.bf16 %v397_v41, %v396_v40  ;;  %v399_v47 = vld [vmem:[%s2509_s4 + $0x58] sm:$0xff]  ;;  %v535_v31 = vld [vmem:[%s2510_s5 + $0x8] sm:$0xff] }
  0x11   :  { %v664_v34 = vld [vmem:[%s2511_s6 + $0x88] sm:$0xff] }
  0x90   :  { %v45_v4 = vpop.xlane.xlu0 %44 }
  0x91   :  { %v48_v5 = vmul.f32 0.03125, %v45_v4  ;;  %v176_v4 = vld [vmem:[%s2508_s3 + $0x58] sm:$0xff] }
  0x93   :  { %v1807_v6 = vsub.f32 %v1795_v0, %v48_v5 }
  0x94   :  { %v42_v7 = vpop.xlane.xlu0 %41 }
  0x95   :  { %v47_v8 = vmul.f32 0.03125, %v42_v7  ;;  %v52_v9 = vmul.f32 %v1807_v6, %v1807_v6  ;;  %v388_v7 = vld [vmem:[%s2509_s4] sm:$0xff] }
  0x97   :  { %v1812_v10 = vsub.f32 %v1800_v1, %v47_v8  ;;  %v56_v11 = vsel %vm39_vm0, %v52_v9, 0.0  ;;  %v389_v8 = vld [vmem:[%s2509_s4 + $0x8] sm:$0xff]  ;;  %v406_v9 = vld [vmem:[%s2509_s4 + $0x90] sm:$0xff] }
  0x98   :  { %57 = vadd.xlane.f32.xlu1 %v56_v11  ;;  %v1528_v17 = vpack.c.bf16 %v389_v8, %v388_v7 }
  0x99   :  { %v51_v12 = vmul.f32 %v1812_v10, %v1812_v10 }
  0x9b   :  { %v53_v13 = vsel %vm39_vm0, %v51_v12, 0.0 }
  0x9c   :  { %54 = vadd.xlane.f32.xlu1 %v53_v13  ;;  %v1520_v13 = vpack.c.bf16 %v171_v3, %v167_v2  ;;  %v1733_v3 = vmov 1966171168  }
 0x125   :  { %v58_v45 = vpop.xlane.xlu1 %57 }
 0x126   :  { %v60_v46 = vmul.f32 0.03125, %v58_v45  ;;  %v1546_v45 = vpack.c.bf16 %v415_v44, %v414_v43 }
 0x128   :  { %v62_v48 = vadd.f32 1e-06, %v60_v46  ;;  %v398_v46 = vld [vmem:[%s2509_s4 + $0x50] sm:$0xff] }
 0x129   :  { %v55_v49 = vpop.xlane.xlu1 %54 }
 0x12a   :  { %1675 = vrsqrt.f32 %v62_v48  ;;  %v59_v50 = vmul.f32 0.03125, %v55_v49  ;;  %v1548_v48 = vpack.c.bf16 %v399_v47, %v398_v46  ;;  %v416_v49 = vld [vmem:[%s2509_s4 + $0xe0] sm:$0xff] }
 0x12c   :  { %v61_v52 = vadd.f32 1e-06, %v59_v50  ;;  %v417_v50 = vld [vmem:[%s2509_s4 + $0xe8] sm:$0xff] }
 0x12e   :  { %1677 = vrsqrt.f32 %v61_v52  ;;  %v1550_v52 = vpack.c.bf16 %v417_v50, %v416_v49 }
 0x134   :  { %v1676_v57 = vpop.eup %1675 }
 0x135   :  { %v66_v58 = vmul.f32 %v1676_v57, %v1807_v6  ;;  %v180_v6 = vld [vmem:[%s2508_s3 + $0x78] sm:$0xff]  ;;  %v401_v57 = vld [vmem:[%s2509_s4 + $0x68] sm:$0xff] }
 0x136   :  { %v1522_v14 = vpack.c.bf16 %v180_v6, %v176_v4  ;;  %v343_v4 = vunpack.c.l.s4 %v1733_v3 }
 0x137   :  { %v72_v60 = vmul.f32 %v70_v56, %v66_v58 }
 0x138   :  { %v1678_v61 = vpop.eup %1677 }
 0x139   :  { %v65_v62 = vmul.f32 %v1678_v61, %v1812_v10  ;;  %v78_v63 = vadd.f32 %v76_v59, %v72_v60  ;;  %v407_v10 = vld [vmem:[%s2509_s4 + $0x98] sm:$0xff] }
 0x13a   :  { %v1530_v19 = vpack.c.bf16 %v407_v10, %v406_v9  ;;  %v419_v60 = vld [vmem:[%s2509_s4 + $0xf8] sm:$0xff] }
 0x13b   :  { %v71_v5 = vmul.f32 %v70_v56, %v65_v62  ;;  %v89_v12 = vrot.slane %v78_v63, 7  ;;  %v400_v56 = vld [vmem:[%s2509_s4 + $0x60] sm:$0xff]  ;;  %v402_v62 = vld [vmem:[%s2509_s4 + $0x70] sm:$0xff] }
 0x13c   :  { %v1552_v58 = vpack.c.bf16 %v401_v57, %v400_v56 }
 0x13d   :  { %v77_v11 = vadd.f32 %v76_v59, %v71_v5  ;;  %v418_v59 = vld [vmem:[%s2509_s4 + $0xf0] sm:$0xff]  ;;  %v344_v5 = vunpack.c.0.s8 %v343_v4 }
 0x13e   :  { %v1554_v61 = vpack.c.bf16 %v419_v60, %v418_v59 }
 0x13f   :  { %1343 = vmatmul.mubr.msk.f32.vlgmr.msra.gmra.mrb[0].mxu1 %vm39_vm0, %v77_v11  ;;  %v91_v18 = vsel %vm90_vm1, %v89_v12, %v77_v11  ;;  %v2018_v9 = vsub.s32 %v344_v5, %v1880_v51 }
 0x140   :  { %1342 = vmatmul.mubr.msk.f32.vlgmr.msra.gmra.mrb[0].mxu0 %vm39_vm0, %v91_v18  ;;  %255 = vmatprep.mubr.f32.mxu1 %v1732_v26 }
 0x141   :  { %1521 = vmatpush1.bf16.msra.mxu0 %v1520_v13  ;;  %326 = vmatprep.mubr.f32.mxu0 %v1732_v26 }
 0x142   :  { %1523 = vmatprep.subr.bf16.mxu0 %v1522_v14  ;;  %1529 = vmatpush3.bf16.msra.mxu1 %v1528_v17 }
 0x143   :  { %1344 = vmatmul.mubr.msk.f32.gmra.mrb[2].mxu1 %vm39_vm0, %v78_v63  ;;  %1531 = vmatprep.subr.bf16.mxu1 %v1530_v19 }
 0x145   :  { %1525 = vmatpush1.bf16.msra.mxu0 %v1524_v24 }
 0x146   :  { %1533 = vmatpush3.bf16.msra.mxu1 %v1532_v25  ;;  %542 = vmatprep.subr.mxu0 %v535_v31 }
 0x147   :  { %1535 = vmatprep.subr.bf16.mxu1 %v1534_v27 }
 0x148   :  { %1345 = vmatmul.mubr.msk.f32.vlgmr.msra.gmra.mrb[2].mxu0 %vm39_vm0, %v77_v11 }
 0x149   :  { %332 = vmatprep.mubr.f32.mxu0 %v1732_v26 }
 0x14a   :  { %1537 = vmatpush3.bf16.msra.mxu1 %v1536_v32  ;;  %v534_v32 = vld [vmem:[%s2510_s5] sm:$0xff] }
 0x14b   :  { %1539 = vmatprep.subr.bf16.mxu1 %v1538_v33  ;;  %543 = vmatpush1.msra.mxu0 %v534_v32  ;;  %v663_v33 = vld [vmem:[%s2511_s6 + $0x80] sm:$0xff]  ;;  %v649_v32 = vld [vmem:[%s2511_s6 + $0x10] sm:$0xff] }
 0x14c   :  { %1346 = vmatmul.mubr.msk.f32.gmra.mrb[4].mxu0 %vm39_vm0, %v78_v63  ;;  %v403_v63 = vld [vmem:[%s2509_s4 + $0x78] sm:$0xff]  ;;  %v1558_v35 = vpack.c.bf16 %v664_v34, %v663_v33  ;;  %v667_v34 = vld [vmem:[%s2511_s6 + $0xa0] sm:$0xff] }
 0x14d   :  { %606 = vmatprep.mubr.f32.mxu0 %v1732_v26  ;;  %v1556_v2 = vpack.c.bf16 %v403_v63, %v402_v62  ;;  %v650_v33 = vld [vmem:[%s2511_s6 + $0x18] sm:$0xff] }
 0x14e   :  { %1541 = vmatpush3.bf16.msra.mxu1 %v1540_v38  ;;  %1559 = vmatprep.subr.bf16.mxu0 %v1558_v35  ;;  %v668_v35 = vld [vmem:[%s2511_s6 + $0xa8] sm:$0xff] }
 0x14f   :  { %1543 = vmatprep.subr.bf16.mxu1 %v1542_v39 }
 0x152   :  { %1545 = vmatpush3.bf16.msra.mxu1 %v1544_v42 }
 0x153   :  { %1547 = vmatprep.subr.bf16.mxu1 %v1546_v45 }
 0x156   :  { %1549 = vmatpush3.bf16.msra.mxu1 %v1548_v48 }
 0x157   :  { %1551 = vmatprep.subr.bf16.mxu1 %v1550_v52 }
 0x15a   :  { %1553 = vmatpush3.bf16.msra.mxu1 %v1552_v58 }
 0x15b   :  { %1555 = vmatprep.subr.bf16.mxu1 %v1554_v61 }
 0x15e   :  { %1557 = vmatpush3.bf16.msra.mxu1 %v1556_v2 }
 0x212   :  { %v251_v6 = vpop.f32.mrb[0].mxu1 }
 0x213   :  { %v160_v7 = vpop.f32.mrb[0].mxu0  ;;  %v253_v8 = vpop.f32.mrb[1].mxu1 }
 0x214   :  { %v162_v10 = vpop.f32.mrb[1].mxu0 }
 0x215   :  { %v341_v11 = vcombine.low %v160_v7, %v162_v10 }
 0x216   :  { %v257_v12 = vpop.f32.mrb[2].mxu1 }
 0x217   :  { %v348_v13 = vrot.slane %v341_v11, %v2018_v9  ;;  %v259_v14 = vpop.f32.mrb[3].mxu1 }
 0x219   :  { %v349_v15 = vcombine.high %v348_v13, %v348_v13  ;;  %v356_v16 = vrot.slane %v348_v13, %v2018_v9 }
 0x21b   :  { %v367_v17 = vrot.slane %v356_v16, %v1883_v53  ;;  %v363_v18 = vrot.slane %v349_v15, %v2018_v9  ;;  %v2024_v19 = vpop.f32.mrb[2].mxu0  ;;  %v371_v20 = vrot.slane %v356_v16, %v1891_v55 }
 0x21c   :  { %v2027_v21 = vpop.f32.mrb[3].mxu0 }
 0x21d   :  { %v384_v22 = vmul.f32 %v367_v17, %v251_v6  ;;  %v375_v23 = vrot.slane %v363_v18, %v1883_v53  ;;  %v379_v24 = vrot.slane %v363_v18, %v1891_v55  ;;  %v385_v25 = vmul.f32 %v371_v20, %v253_v8  ;;  %v647_v20 = vld [vmem:[%s2511_s6] sm:$0xff] }
 0x21f   :  { %v386_v27 = vmul.f32 %v375_v23, %v257_v12  ;;  %v387_v28 = vmul.f32 %v379_v24, %v259_v14  ;;  %v2031_v29 = vpop.f32.mrb[4].mxu0  ;;  %484 = vmatprep.mubr.f32.mxu1 %v385_v25  ;;  %v665_v23 = vld [vmem:[%s2511_s6 + $0x90] sm:$0xff]  ;;  %v666_v24 = vld [vmem:[%s2511_s6 + $0x98] sm:$0xff] }
 0x220   :  { %v2033_v30 = vpop.f32.mrb[5].mxu0  ;;  %485 = vmatmul.mubr.f32.vlgmr.msra.gmra.mrb[4].mxu1 %v384_v22  ;;  %v648_v22 = vld [vmem:[%s2511_s6 + $0x8] sm:$0xff]  ;;  %v1562_v31 = vpack.c.bf16 %v666_v24, %v665_v23 }
 0x221   :  { %489 = vmatprep.mubr.f32.mxu1 %v387_v28 }
 0x224   :  { %490 = vmatmul.mubr.f32.gmra.mrb[6].mxu1 %v386_v27  ;;  %v1560_v27 = vpack.c.bf16 %v648_v22, %v647_v20 }
 0x225   :  { %942 = vmatprep.mubr.f32.mxu1 %v1732_v26 }
 0x2f3   :  { %v1385_v36 = vpop.f32.mrb[4].mxu1 }
 0x2f4   :  { %v1386_v37 = vpop.f32.mrb[5].mxu1 }
 0x2f5   :  { %v1387_v38 = vadd.f32 %v1386_v37, %v1385_v36  ;;  %v1564_v37 = vpack.c.bf16 %v650_v33, %v649_v32 }
 0x2f7   :  { %v496_v39 = vsel %vm495_vm2, %v1387_v38, -inf  ;;  %v1388_v40 = vpop.f32.mrb[6].mxu1 }
 0x2f8   :  { %v497_v41 = vrot.slane %v496_v39, 4  ;;  %v1389_v42 = vpop.f32.mrb[7].mxu1 }
 0x2f9   :  { %v1390_v43 = vadd.f32 %v1389_v42, %v1388_v40  ;;  %v651_v40 = vld [vmem:[%s2511_s6 + $0x20] sm:$0xff] }
 0x2fa   :  { %v498_v44 = vmax.f32 %v496_v39, %v497_v41  ;;  %v1566_v39 = vpack.c.bf16 %v668_v35, %v667_v34  ;;  %v652_v41 = vld [vmem:[%s2511_s6 + $0x28] sm:$0xff] }
 0x2fb   :  { %v503_v45 = vsel %vm495_vm2, %v1390_v43, -inf  ;;  %v1568_v42 = vpack.c.bf16 %v652_v41, %v651_v40 }
 0x2fc   :  { %v499_v46 = vrot.slane %v498_v44, 2  ;;  %v504_v47 = vrot.slane %v503_v45, 4 }
 0x2fe   :  { %v500_v48 = vmax.f32 %v498_v44, %v499_v46  ;;  %v505_v49 = vmax.f32 %v503_v45, %v504_v47  ;;  %v670_v44 = vld [vmem:[%s2511_s6 + $0xb8] sm:$0xff]  ;;  %v653_v46 = vld [vmem:[%s2511_s6 + $0x30] sm:$0xff] }
 0x2ff   :  { %v654_v47 = vld [vmem:[%s2511_s6 + $0x38] sm:$0xff] }
 0x300   :  { %v501_v50 = vrot.slane %v500_v48, 1  ;;  %v506_v52 = vrot.slane %v505_v49, 2 }
 0x302   :  { %v502_v56 = vmax.f32 %v500_v48, %v501_v50  ;;  %v507_v57 = vmax.f32 %v505_v49, %v506_v52  ;;  %v1572_v48 = vpack.c.bf16 %v654_v47, %v653_v46  ;;  %v671_v49 = vld [vmem:[%s2511_s6 + $0xc0] sm:$0xff]  ;;  %v672_v50 = vld [vmem:[%s2511_s6 + $0xc8] sm:$0xff] }
 0x303   :  { %v1574_v52 = vpack.c.bf16 %v672_v50, %v671_v49 }
 0x304   :  { %v510_v58 = vsub.f32 %v1387_v38, %v502_v56  ;;  %v508_v59 = vrot.slane %v507_v57, 1  ;;  %v655_v56 = vld [vmem:[%s2511_s6 + $0x40] sm:$0xff] }
 0x306   :  { %v512_v60 = vmul.f32 1.442695, %v510_v58  ;;  %v509_v61 = vmax.f32 %v507_v57, %v508_v59  ;;  %v656_v57 = vld [vmem:[%s2511_s6 + $0x48] sm:$0xff]  ;;  %v673_v59 = vld [vmem:[%s2511_s6 + $0xd0] sm:$0xff] }
 0x307   :  { %v1576_v58 = vpack.c.bf16 %v656_v57, %v655_v56 }
 0x308   :  { %1679 = vpow2.f32 %v512_v60  ;;  %v511_v62 = vsub.f32 %v1390_v43, %v509_v61  ;;  %v669_v43 = vld [vmem:[%s2511_s6 + $0xb0] sm:$0xff]  ;;  %v674_v60 = vld [vmem:[%s2511_s6 + $0xd8] sm:$0xff] }
 0x309   :  { %v1570_v45 = vpack.c.bf16 %v670_v44, %v669_v43  ;;  %v1578_v61 = vpack.c.bf16 %v674_v60, %v673_v59 }
 0x30a   :  { %v514_v63 = vmul.f32 1.442695, %v511_v62  ;;  %v657_v62 = vld [vmem:[%s2511_s6 + $0x50] sm:$0xff] }
 0x30c   :  { %1681 = vpow2.f32 %v514_v63  ;;  %v658_v63 = vld [vmem:[%s2511_s6 + $0x58] sm:$0xff] }
 0x312   :  { %v1680_v2 = vpop.eup %1679 }
 0x313   :  { %v516_v3 = vsel %vm495_vm2, %v1680_v2, 0.0 }
 0x314   :  { %v517_v4 = vrot.slane %v516_v3, 4 }
 0x316   :  { %v1682_v5 = vpop.eup %1681  ;;  %v518_v6 = vadd.f32 %v517_v4, %v516_v3  ;;  %v675_v3 = vld [vmem:[%s2511_s6 + $0xe0] sm:$0xff]  ;;  %v676_v4 = vld [vmem:[%s2511_s6 + $0xe8] sm:$0xff] }
 0x317   :  { %v523_v7 = vsel %vm495_vm2, %v1682_v5, 0.0 }
 0x318   :  { %v519_v8 = vrot.slane %v518_v6, 2  ;;  %v524_v10 = vrot.slane %v523_v7, 4 }
 0x31a   :  { %v520_v11 = vadd.f32 %v519_v8, %v518_v6  ;;  %v525_v12 = vadd.f32 %v524_v10, %v523_v7  ;;  %v659_v6 = vld [vmem:[%s2511_s6 + $0x60] sm:$0xff]  ;;  %v660_v7 = vld [vmem:[%s2511_s6 + $0x68] sm:$0xff]  ;;  %v677_v10 = vld [vmem:[%s2511_s6 + $0xf0] sm:$0xff] }
 0x31b   :  { %v1584_v8 = vpack.c.bf16 %v660_v7, %v659_v6 }
 0x31c   :  { %v521_v13 = vrot.slane %v520_v11, 1  ;;  %v526_v14 = vrot.slane %v525_v12, 2 }
 0x31e   :  { %v522_v15 = vadd.f32 %v521_v13, %v520_v11  ;;  %v527_v16 = vadd.f32 %v526_v14, %v525_v12  ;;  %v678_v11 = vld [vmem:[%s2511_s6 + $0xf8] sm:$0xff]  ;;  %v661_v13 = vld [vmem:[%s2511_s6 + $0x70] sm:$0xff] }
 0x31f   :  { %v1586_v12 = vpack.c.bf16 %v678_v11, %v677_v10  ;;  %v662_v14 = vld [vmem:[%s2511_s6 + $0x78] sm:$0xff] }
 0x320   :  { %1683 = vrcp.f32 %v522_v15  ;;  %v528_v17 = vrot.slane %v527_v16, 1  ;;  %v1588_v15 = vpack.c.bf16 %v662_v14, %v661_v13 }
 0x322   :  { %v529_v18 = vadd.f32 %v528_v17, %v527_v16 }
 0x324   :  { %1685 = vrcp.f32 %v529_v18 }
 0x32a   :  { %v1684_v25 = vpop.eup %1683 }
 0x32b   :  { %v532_v28 = vmul.f32 %v1684_v25, %v1680_v2  ;;  %v1580_v2 = vpack.c.bf16 %v658_v63, %v657_v62 }
 0x32d   :  { %1347 = vmatmul.mubr.msk.f32.vlgmr.msra.gmra.mrb[6].mxu0 %vm495_vm2, %v532_v28 }
 0x32e   :  { %v1686_v36 = vpop.eup %1685  ;;  %612 = vmatprep.mubr.f32.mxu0 %v1732_v26  ;;  %1561 = vmatpush3.bf16.msra.mxu0 %v1560_v27 }
 0x32f   :  { %v533_v38 = vmul.f32 %v1686_v36, %v1682_v5  ;;  %1563 = vmatprep.subr.bf16.mxu0 %v1562_v31  ;;  %v1582_v5 = vpack.c.bf16 %v676_v4, %v675_v3 }
 0x331   :  { %1348 = vmatmul.mubr.msk.f32.gmra.mrb[8].mxu0 %vm495_vm2, %v533_v38 }
 0x332   :  { %1565 = vmatpush3.bf16.msra.mxu0 %v1564_v37 }
 0x333   :  { %1567 = vmatprep.subr.bf16.mxu0 %v1566_v39 }
 0x336   :  { %1569 = vmatpush3.bf16.msra.mxu0 %v1568_v42 }
 0x337   :  { %1571 = vmatprep.subr.bf16.mxu0 %v1570_v45 }
 0x33a   :  { %1573 = vmatpush3.bf16.msra.mxu0 %v1572_v48 }
 0x33b   :  { %1575 = vmatprep.subr.bf16.mxu0 %v1574_v52  ;;  %v681_v52 = vsub.s32 4, %v1880_v51 }
 0x33d   :  { %v682_v57 = vrot.slane %v1888_v54, %v681_v52  ;;  %v836_v52 = vld [vmem:[%s2512_s7 + $0x10] sm:$0xff] }
 0x33e   :  { %1577 = vmatpush3.bf16.msra.mxu0 %v1576_v58 }
 0x33f   :  { %1579 = vmatprep.subr.bf16.mxu0 %v1578_v61 }
 0x342   :  { %1581 = vmatpush3.bf16.msra.mxu0 %v1580_v2 }
 0x343   :  { %1583 = vmatprep.subr.bf16.mxu0 %v1582_v5 }
 0x346   :  { %1585 = vmatpush3.bf16.msra.mxu0 %v1584_v8 }
 0x347   :  { %1587 = vmatprep.subr.bf16.mxu0 %v1586_v12 }
 0x34a   :  { %1589 = vmatpush3.bf16.msra.mxu0 %v1588_v15 }
 0x400   :  { %v608_v16 = vpop.f32.mrb[6].mxu0 }
 0x401   :  { %v619_v17 = vmul.f32 %v608_v16, %v2024_v19  ;;  %v610_v18 = vpop.f32.mrb[7].mxu0 }
 0x402   :  { %v620_v20 = vmul.f32 %v610_v18, %v2027_v21  ;;  %v839_v18 = vld [vmem:[%s2512_s7 + $0x28] sm:$0xff] }
 0x403   :  { %v623_v22 = vrot.slane %v619_v17, 4 }
 0x404   :  { %v629_v23 = vrot.slane %v620_v20, 4  ;;  %v614_v24 = vpop.f32.mrb[8].mxu0 }
 0x405   :  { %v624_v25 = vadd.f32 %v623_v22, %v619_v17  ;;  %v621_v27 = vmul.f32 %v614_v24, %v2031_v29  ;;  %v616_v28 = vpop.f32.mrb[9].mxu0  ;;  %v835_v17 = vld [vmem:[%s2512_s7 + $0x8] sm:$0xff]  ;;  %v834_v22 = vld [vmem:[%s2512_s7] sm:$0xff] }
 0x406   :  { %v630_v31 = vadd.f32 %v629_v23, %v620_v20  ;;  %v622_v32 = vmul.f32 %v616_v28, %v2033_v30  ;;  %v1590_v20 = vpack.c.bf16 %v839_v18, %v835_v17  ;;  %v838_v23 = vld [vmem:[%s2512_s7 + $0x20] sm:$0xff]  ;;  %v1109_v18 = vld [vmem:[%s2514_s9 + $0x28] sm:$0xff] }
 0x407   :  { %v625_v33 = vrot.slane %v624_v25, 2  ;;  %v635_v34 = vrot.slane %v621_v27, 4  ;;  %v1592_v24 = vpack.c.bf16 %v838_v23, %v834_v22  ;;  %v1108_v17 = vld [vmem:[%s2514_s9 + $0x20] sm:$0xff] }
 0x408   :  { %v631_v35 = vrot.slane %v630_v31, 2  ;;  %v641_v36 = vrot.slane %v622_v32, 4  ;;  %1591 = vmatprep.subr.bf16.mxu1 %v1590_v20  ;;  %v1616_v22 = vpack.c.bf16 %v1109_v18, %v1108_v17  ;;  %v1136_v23 = vld [vmem:[%s2514_s9 + $0x100] sm:$0xff]  ;;  %v1162_v17 = vld [vmem:[%s2514_s9 + $0x1d0] sm:$0xff]  ;;  %v1163_v18 = vld [vmem:[%s2514_s9 + $0x1d8] sm:$0xff] }
 0x409   :  { %v626_v37 = vadd.f32 %v625_v33, %v624_v25  ;;  %v636_v38 = vadd.f32 %v635_v34, %v621_v27  ;;  %1593 = vmatpush1.bf16.msra.mxu1 %v1592_v24  ;;  %v843_v25 = vld [vmem:[%s2512_s7 + $0x48] sm:$0xff]  ;;  %v837_v34 = vld [vmem:[%s2512_s7 + $0x18] sm:$0xff] }
 0x40a   :  { %v632_v19 = vadd.f32 %v631_v35, %v630_v31  ;;  %v642_v39 = vadd.f32 %v641_v36, %v622_v32  ;;  %v847_v27 = vld [vmem:[%s2512_s7 + $0x68] sm:$0xff]  ;;  %v842_v31 = vld [vmem:[%s2512_s7 + $0x40] sm:$0xff]  ;;  %v841_v35 = vld [vmem:[%s2512_s7 + $0x38] sm:$0xff] }
 0x40b   :  { %v637_v40 = vrot.slane %v636_v38, 2  ;;  %v627_v41 = vrot.slane %v626_v37, 1  ;;  %v1594_v28 = vpack.c.bf16 %v847_v27, %v843_v25  ;;  %v846_v32 = vld [vmem:[%s2512_s7 + $0x60] sm:$0xff]  ;;  %v1598_v36 = vpack.c.bf16 %v841_v35, %v837_v34  ;;  %v1137_v24 = vld [vmem:[%s2514_s9 + $0x108] sm:$0xff]  ;;  %v1126_v27 = vld [vmem:[%s2514_s9 + $0xb0] sm:$0xff] }
 0x40c   :  { %v643_v21 = vrot.slane %v642_v39, 2  ;;  %v633_v43 = vrot.slane %v632_v19, 1  ;;  %v1596_v33 = vpack.c.bf16 %v846_v32, %v842_v31  ;;  %v1640_v25 = vpack.c.bf16 %v1137_v24, %v1136_v23  ;;  %v1154_v31 = vld [vmem:[%s2514_s9 + $0x190] sm:$0xff]  ;;  %v1111_v35 = vld [vmem:[%s2514_s9 + $0x38] sm:$0xff] }
 0x40d   :  { %v638_v42 = vadd.f32 %v637_v40, %v636_v38  ;;  %v628_v46 = vadd.f32 %v627_v41, %v626_v37  ;;  %1595 = vmatprep.subr.bf16.mxu1 %v1594_v28  ;;  %v1120_v37 = vld [vmem:[%s2514_s9 + $0x80] sm:$0xff]  ;;  %v1121_v38 = vld [vmem:[%s2514_s9 + $0x88] sm:$0xff]  ;;  %v1127_v28 = vld [vmem:[%s2514_s9 + $0xb8] sm:$0xff] }
 0x40e   :  { %v644_v44 = vadd.f32 %v643_v21, %v642_v39  ;;  %v634_v48 = vadd.f32 %v633_v43, %v632_v19  ;;  %1597 = vmatpush1.bf16.msra.mxu1 %v1596_v33  ;;  %v1104_v19 = vld [vmem:[%s2514_s9] sm:$0xff]  ;;  %v1606_v39 = vpack.c.bf16 %v1121_v38, %v1120_v37  ;;  %v1105_v40 = vld [vmem:[%s2514_s9 + $0x8] sm:$0xff]  ;;  %v1618_v32 = vpack.c.bf16 %v1127_v28, %v1126_v27  ;;  %v1155_v33 = vld [vmem:[%s2514_s9 + $0x198] sm:$0xff] }
 0x40f   :  { %v639_v45 = vrot.slane %v638_v42, 1  ;;  %1599 = vmatprep.subr.bf16.mxu1 %v1598_v36  ;;  %v1608_v21 = vpack.c.bf16 %v1105_v40, %v1104_v19  ;;  %v1110_v34 = vld [vmem:[%s2514_s9 + $0x30] sm:$0xff]  ;;  %v1642_v36 = vpack.c.bf16 %v1155_v33, %v1154_v31  ;;  %v1139_v19 = vld [vmem:[%s2514_s9 + $0x118] sm:$0xff]  ;;  %v1128_v40 = vld [vmem:[%s2514_s9 + $0xc0] sm:$0xff] }
 0x410   :  { %v645_v29 = vrot.slane %v644_v44, 1  ;;  %1607 = vmatprep.subr.bf16.mxu0 %v1606_v39  ;;  %v1620_v37 = vpack.c.bf16 %v1111_v35, %v1110_v34  ;;  %v1138_v38 = vld [vmem:[%s2514_s9 + $0x110] sm:$0xff]  ;;  %v1119_v24 = vld [vmem:[%s2514_s9 + $0x78] sm:$0xff]  ;;  %v1165_v33 = vld [vmem:[%s2514_s9 + $0x1e8] sm:$0xff] }
 0x411   :  { %v640_v47 = vadd.f32 %v639_v45, %v638_v42  ;;  %v1644_v39 = vpack.c.bf16 %v1139_v19, %v1138_v38  ;;  %v1118_v23 = vld [vmem:[%s2514_s9 + $0x70] sm:$0xff]  ;;  %v1147_v28 = vld [vmem:[%s2514_s9 + $0x158] sm:$0xff]  ;;  %v1148_v35 = vld [vmem:[%s2514_s9 + $0x160] sm:$0xff] }
 0x412   :  { %v646_v30 = vadd.f32 %v645_v29, %v644_v44  ;;  %v1636_v27 = vpack.c.bf16 %v1119_v24, %v1118_v23  ;;  %v1166_v38 = vld [vmem:[%s2514_s9 + $0x1f0] sm:$0xff]  ;;  %v1167_v19 = vld [vmem:[%s2514_s9 + $0x1f8] sm:$0xff] }
 0x413   :  { %v687_v49 = vsel %vm90_vm1, %v640_v47, %v628_v46  ;;  %v824_v46 = vsub.s32 2, %v1880_v51  ;;  %v830_v47 = vsub.s32 3, %v1880_v51 }
 0x414   :  { %v688_v50 = vsel %vm90_vm1, %v646_v30, %v634_v48 }
 0x415   :  { %755 = vmatprep.mubr.f32.mxu0 %v688_v50  ;;  %v825_v48 = vrot.slane %v1888_v54, %v824_v46 }
 0x416   :  { %756 = vmatmul.mubr.f32.vlgmr.msra.gmra.mrb[10].mxu0 %v687_v49  ;;  %v831_v49 = vrot.slane %v1888_v54, %v830_v47 }
 0x417   :  { %1609 = vmatpush3.bf16.msra.mxu0 %v1608_v21  ;;  %v1129_v21 = vld [vmem:[%s2514_s9 + $0xc8] sm:$0xff] }
 0x4e9   :  { %v1423_v56 = vpop.f32.mrb[10].mxu0 }
 0x4ea   :  { %v1424_v58 = vpop.f32.mrb[11].mxu0 }
 0x4eb   :  { %v1425_v59 = vadd.f32 %v1424_v58, %v1423_v56  ;;  %v840_v56 = vld [vmem:[%s2512_s7 + $0x30] sm:$0xff]  ;;  %v845_v58 = vld [vmem:[%s2512_s7 + $0x58] sm:$0xff] }
 0x4ed   :  { %v758_v60 = vadd.f32 %v1425_v59, %v682_v57  ;;  %v849_v59 = vld [vmem:[%s2512_s7 + $0x78] sm:$0xff] }
 0x4ef   :  { %v768_v61 = vrot.slane %v758_v60, %v2018_v9 }
 0x4f1   :  { %v769_v62 = vcombine.high %v768_v61, %v768_v61  ;;  %v776_v63 = vrot.slane %v768_v61, %v2018_v9  ;;  %v1600_v61 = vpack.c.bf16 %v840_v56, %v836_v52  ;;  %v1130_v52 = vld [vmem:[%s2514_s9 + $0xd0] sm:$0xff]  ;;  %v1131_v56 = vld [vmem:[%s2514_s9 + $0xd8] sm:$0xff] }
 0x4f3   :  { %v783_v2 = vrot.slane %v769_v62, %v2018_v9  ;;  %v787_v3 = vrot.slane %v776_v63, %v1883_v53  ;;  %v1602_v63 = vpack.c.bf16 %v849_v59, %v845_v58  ;;  %v1626_v58 = vpack.c.bf16 %v1131_v56, %v1130_v52  ;;  %v1159_v59 = vld [vmem:[%s2514_s9 + $0x1b8] sm:$0xff] }
 0x4f5   :  { %v2158_v4 = vadd.f32 %v787_v3, %v1800_v1  ;;  %v791_v5 = vrot.slane %v783_v2, %v1883_v53  ;;  %v844_v3 = vld [vmem:[%s2512_s7 + $0x50] sm:$0xff] }
 0x4f7   :  { %v796_v6 = vsel %vm39_vm0, %v2158_v4, 0.0  ;;  %v2164_v7 = vadd.f32 %v791_v5, %v1795_v0  ;;  %v848_v5 = vld [vmem:[%s2512_s7 + $0x70] sm:$0xff] }
 0x4f8   :  { %797 = vadd.xlane.f32.xlu0 %v796_v6  ;;  %v1604_v6 = vpack.c.bf16 %v848_v5, %v844_v3  ;;  %v1132_v5 = vld [vmem:[%s2514_s9 + $0xe0] sm:$0xff] }
 0x4f9   :  { %v799_v8 = vsel %vm39_vm0, %v2164_v7, 0.0 }
 0x4fa   :  { %800 = vadd.xlane.f32.xlu1 %v799_v8 }
 0x585   :  { %v798_v10 = vpop.xlane.xlu0 %797 }
 0x586   :  { %v802_v9 = vmul.f32 0.03125, %v798_v10  ;;  %v1122_v10 = vld [vmem:[%s2514_s9 + $0x90] sm:$0xff] }
 0x587   :  { %v801_v11 = vpop.xlane.xlu1 %800 }
 0x588   :  { %v804_v12 = vsub.f32 %v2158_v4, %v802_v9  ;;  %v803_v1 = vmul.f32 0.03125, %v801_v11  ;;  %v1123_v9 = vld [vmem:[%s2514_s9 + $0x98] sm:$0xff] }
 0x589   :  { %v1610_v11 = vpack.c.bf16 %v1123_v9, %v1122_v10  ;;  %v1161_v9 = vld [vmem:[%s2514_s9 + $0x1c8] sm:$0xff] }
 0x58a   :  { %v805_v13 = vsub.f32 %v2164_v7, %v803_v1  ;;  %v806_v14 = vmul.f32 %v804_v12, %v804_v12  ;;  %v1107_v1 = vld [vmem:[%s2514_s9 + $0x18] sm:$0xff] }
 0x58b   :  { %1611 = vmatprep.subr.bf16.mxu0 %v1610_v11  ;;  %v1116_v11 = vld [vmem:[%s2514_s9 + $0x60] sm:$0xff] }
 0x58c   :  { %v808_v15 = vsel %vm39_vm0, %v806_v14, 0.0  ;;  %v807_v16 = vmul.f32 %v805_v13, %v805_v13  ;;  %v1125_v14 = vld [vmem:[%s2514_s9 + $0xa8] sm:$0xff] }
 0x58d   :  { %809 = vadd.xlane.f32.xlu0 %v808_v15  ;;  %v1152_v15 = vld [vmem:[%s2514_s9 + $0x180] sm:$0xff] }
 0x58e   :  { %v811_v0 = vsel %vm39_vm0, %v807_v16, 0.0 }
 0x58f   :  { %812 = vadd.xlane.f32.xlu1 %v811_v0  ;;  %v1153_v0 = vld [vmem:[%s2514_s9 + $0x188] sm:$0xff] }
 0x590   :  { %v1638_v20 = vpack.c.bf16 %v1153_v0, %v1152_v15  ;;  %v1134_v15 = vld [vmem:[%s2514_s9 + $0xf0] sm:$0xff]  ;;  %v1135_v0 = vld [vmem:[%s2514_s9 + $0xf8] sm:$0xff] }
 0x61a   :  { %v810_v41 = vpop.xlane.xlu0 %809 }
 0x61b   :  { %v814_v42 = vmul.f32 0.03125, %v810_v41  ;;  %v1156_v41 = vld [vmem:[%s2514_s9 + $0x1a0] sm:$0xff] }
 0x61c   :  { %v813_v43 = vpop.xlane.xlu1 %812 }
 0x61d   :  { %v816_v44 = vadd.f32 1e-06, %v814_v42  ;;  %v815_v45 = vmul.f32 0.03125, %v813_v43  ;;  %v1622_v42 = vpack.c.bf16 %v1129_v21, %v1128_v40  ;;  %v1157_v43 = vld [vmem:[%s2514_s9 + $0x1a8] sm:$0xff]  ;;  %v1150_v40 = vld [vmem:[%s2514_s9 + $0x170] sm:$0xff]  ;;  %v1151_v21 = vld [vmem:[%s2514_s9 + $0x178] sm:$0xff] }
 0x61f   :  { %1687 = vrsqrt.f32 %v816_v44  ;;  %v817_v29 = vadd.f32 1e-06, %v815_v45  ;;  %v1112_v44 = vld [vmem:[%s2514_s9 + $0x40] sm:$0xff]  ;;  %v1113_v45 = vld [vmem:[%s2514_s9 + $0x48] sm:$0xff] }
 0x621   :  { %1689 = vrsqrt.f32 %v817_v29  ;;  %v1646_v29 = vpack.c.bf16 %v1157_v43, %v1156_v41  ;;  %v1668_v41 = vpack.c.bf16 %v1151_v21, %v1150_v40 }
 0x629   :  { %v1688_v30 = vpop.eup %1687 }
 0x62a   :  { %v820_v50 = vmul.f32 %v1688_v30, %v804_v12  ;;  %v1106_v12 = vld [vmem:[%s2514_s9 + $0x10] sm:$0xff]  ;;  %v1140_v30 = vld [vmem:[%s2514_s9 + $0x120] sm:$0xff] }
 0x62b   :  { %v1690_v57 = vpop.eup %1689 }
 0x62c   :  { %v826_v60 = vmul.f32 %v825_v48, %v820_v50  ;;  %v821_v54 = vmul.f32 %v1690_v57, %v805_v13  ;;  %v1124_v13 = vld [vmem:[%s2514_s9 + $0xa0] sm:$0xff]  ;;  %v1158_v57 = vld [vmem:[%s2514_s9 + $0x1b0] sm:$0xff] }
 0x62d   :  { %v1614_v16 = vpack.c.bf16 %v1125_v14, %v1124_v13  ;;  %v1144_v13 = vld [vmem:[%s2514_s9 + $0x140] sm:$0xff]  ;;  %v1145_v14 = vld [vmem:[%s2514_s9 + $0x148] sm:$0xff] }
 0x62e   :  { %v832_v62 = vadd.f32 %v831_v49, %v826_v60  ;;  %v827_v2 = vmul.f32 %v825_v48, %v821_v54  ;;  %v1624_v48 = vpack.c.bf16 %v1113_v45, %v1112_v44  ;;  %v1114_v60 = vld [vmem:[%s2514_s9 + $0x50] sm:$0xff]  ;;  %v1115_v54 = vld [vmem:[%s2514_s9 + $0x58] sm:$0xff] }
 0x630   :  { %1349 = vmatmul.mubr.msk.f32.vlgmr.msra.gmra.mrb[8].mxu1 %vm39_vm0, %v832_v62  ;;  %v833_v8 = vadd.f32 %v831_v49, %v827_v2  ;;  %v1141_v49 = vld [vmem:[%s2514_s9 + $0x128] sm:$0xff]  ;;  %v1143_v2 = vld [vmem:[%s2514_s9 + $0x138] sm:$0xff] }
 0x631   :  { %1601 = vmatpush1.bf16.msra.mxu1 %v1600_v61  ;;  %948 = vmatprep.mubr.f32.mxu1 %v1732_v26  ;;  %v1648_v50 = vpack.c.bf16 %v1141_v49, %v1140_v30  ;;  %v1650_v61 = vpack.c.bf16 %v1159_v59, %v1158_v57 }
 0x632   :  { %1603 = vmatprep.subr.bf16.mxu1 %v1602_v63  ;;  %v1142_v63 = vld [vmem:[%s2514_s9 + $0x130] sm:$0xff] }
 0x633   :  { %v1652_v3 = vpack.c.bf16 %v1143_v2, %v1142_v63 }
 0x634   :  { %1350 = vmatmul.mubr.msk.f32.gmra.mrb[10].mxu1 %vm39_vm0, %v833_v8 }
 0x635   :  { %1605 = vmatpush1.bf16.msra.mxu1 %v1604_v6  ;;  %1019 = vmatprep.mubr.f32.mxu1 %v1732_v26  ;;  %v1133_v6 = vld [vmem:[%s2514_s9 + $0xe8] sm:$0xff] }
 0x636   :  { %1639 = vmatprep.subr.bf16.mxu1 %v1638_v20  ;;  %v1630_v10 = vpack.c.bf16 %v1133_v6, %v1132_v5  ;;  %v1634_v20 = vpack.c.bf16 %v1135_v0, %v1134_v15 }
 0x638   :  { %1351 = vmatmul.mubr.msk.f32.vlgmr.msra.gmra.mrb[12].mxu1 %vm39_vm0, %v832_v62  ;;  %v1628_v62 = vpack.c.bf16 %v1115_v54, %v1114_v60 }
 0x639   :  { %1025 = vmatprep.mubr.f32.mxu1 %v1732_v26  ;;  %v1612_v26 = vpack.c.bf16 %v1107_v1, %v1106_v12  ;;  %1641 = vmatpush3.bf16.msra.mxu1 %v1640_v25  ;;  %v1117_v12 = vld [vmem:[%s2514_s9 + $0x68] sm:$0xff]  ;;  %v1146_v25 = vld [vmem:[%s2514_s9 + $0x150] sm:$0xff] }
 0x63a   :  { %1643 = vmatprep.subr.bf16.mxu1 %v1642_v36  ;;  %v1660_v31 = vpack.c.bf16 %v1147_v28, %v1146_v25  ;;  %v1149_v36 = vld [vmem:[%s2514_s9 + $0x168] sm:$0xff] }
 0x63b   :  { %1613 = vmatpush3.bf16.msra.mxu0 %v1612_v26  ;;  %v1632_v26 = vpack.c.bf16 %v1117_v12, %v1116_v11 }
 0x63c   :  { %1352 = vmatmul.mubr.msk.f32.gmra.mrb[14].mxu1 %vm39_vm0, %v833_v8  ;;  %1615 = vmatprep.subr.bf16.mxu0 %v1614_v16  ;;  %v1160_v8 = vld [vmem:[%s2514_s9 + $0x1c0] sm:$0xff]  ;;  %v1656_v16 = vpack.c.bf16 %v1145_v14, %v1144_v13 }
 0x63d   :  { %1645 = vmatpush3.bf16.msra.mxu1 %v1644_v39  ;;  %v1654_v1 = vpack.c.bf16 %v1161_v9, %v1160_v8  ;;  %v1666_v39 = vpack.c.bf16 %v1167_v19, %v1166_v38 }
 0x63e   :  { %1647 = vmatprep.subr.bf16.mxu1 %v1646_v29 }
 0x63f   :  { %1617 = vmatpush3.bf16.msra.mxu0 %v1616_v22  ;;  %v1658_v22 = vpack.c.bf16 %v1163_v18, %v1162_v17 }
 0x640   :  { %1619 = vmatprep.subr.bf16.mxu0 %v1618_v32  ;;  %v1164_v32 = vld [vmem:[%s2514_s9 + $0x1e0] sm:$0xff] }
 0x641   :  { %1649 = vmatpush3.bf16.msra.mxu1 %v1648_v50  ;;  %v1662_v34 = vpack.c.bf16 %v1165_v33, %v1164_v32 }
 0x642   :  { %1651 = vmatprep.subr.bf16.mxu1 %v1650_v61 }
 0x643   :  { %1621 = vmatpush3.bf16.msra.mxu0 %v1620_v37  ;;  %v1664_v37 = vpack.c.bf16 %v1149_v36, %v1148_v35 }
 0x644   :  { %1623 = vmatprep.subr.bf16.mxu0 %v1622_v42  ;;  %v850_v42 = vld [vmem:[%s2513_s8] sm:$0xf] }
 0x645   :  { %1653 = vmatpush3.bf16.msra.mxu1 %v1652_v3  ;;  %v855_v43 = vrot.slane %v850_v42, %v1883_v53  ;;  %v859_v44 = vrot.slane %v850_v42, %v1891_v55  ;;  %v863_v53 = vrot.slane %v850_v42, %v824_v46  ;;  %v867_v60 = vrot.slane %v850_v42, %v830_v47 }
 0x646   :  { %1655 = vmatprep.subr.bf16.mxu1 %v1654_v1 }
 0x647   :  { %1625 = vmatpush3.bf16.msra.mxu0 %v1624_v48 }
 0x648   :  { %1627 = vmatprep.subr.bf16.mxu0 %v1626_v58 }
 0x649   :  { %1657 = vmatpush3.bf16.msra.mxu1 %v1656_v16 }
 0x64a   :  { %1659 = vmatprep.subr.bf16.mxu1 %v1658_v22 }
 0x64b   :  { %1629 = vmatpush3.bf16.msra.mxu0 %v1628_v62 }
 0x64c   :  { %1631 = vmatprep.subr.bf16.mxu0 %v1630_v10 }
 0x64d   :  { %1661 = vmatpush3.bf16.msra.mxu1 %v1660_v31 }
 0x64e   :  { %1663 = vmatprep.subr.bf16.mxu1 %v1662_v34 }
 0x64f   :  { %1633 = vmatpush3.bf16.msra.mxu0 %v1632_v26 }
 0x650   :  { %1635 = vmatprep.subr.bf16.mxu0 %v1634_v20 }
 0x651   :  { %1665 = vmatpush3.bf16.msra.mxu1 %v1664_v37 }
 0x652   :  { %1667 = vmatprep.subr.bf16.mxu1 %v1666_v39 }
 0x653   :  { %1637 = vmatpush3.bf16.msra.mxu0 %v1636_v27 }
 0x655   :  { %1669 = vmatpush3.bf16.msra.mxu1 %v1668_v41 }
 0x703   :  { %v944_v45 = vpop.f32.mrb[8].mxu1 }
 0x704   :  { %v2432_v29 = vadd.f32 %v944_v45, %v855_v43  ;;  %v946_v48 = vpop.f32.mrb[9].mxu1 }
 0x705   :  { %v2434_v30 = vadd.f32 %v946_v48, %v859_v44 }
 0x706   :  { %v1040_v49 = vmul.f32 0.044715, %v2432_v29 }
 0x707   :  { %v1041_v50 = vmul.f32 0.044715, %v2434_v30  ;;  %v950_v52 = vpop.f32.mrb[10].mxu1  ;;  %v1033_v45 = vmul.f32 0.5, %v2434_v30 }
 0x708   :  { %v1048_v56 = vmul.f32 %v1040_v49, %v2432_v29  ;;  %v2439_v57 = vadd.f32 %v950_v52, %v855_v43  ;;  %v952_v58 = vpop.f32.mrb[11].mxu1  ;;  %v1032_v49 = vmul.f32 0.5, %v2432_v29 }
 0x709   :  { %v1049_v55 = vmul.f32 %v1041_v50, %v2434_v30  ;;  %v2444_v59 = vadd.f32 %v952_v58, %v859_v44 }
 0x70a   :  { %v1056_v54 = vmul.f32 %v1048_v56, %v2432_v29  ;;  %v1044_v61 = vmul.f32 0.044715, %v2439_v57 }
 0x70b   :  { %v1045_v62 = vmul.f32 0.044715, %v2444_v59  ;;  %v1021_v63 = vpop.f32.mrb[12].mxu1  ;;  %v1057_v2 = vmul.f32 %v1049_v55, %v2434_v30  ;;  %v1037_v55 = vmul.f32 0.5, %v2444_v59 }
 0x70c   :  { %v1064_v3 = vadd.f32 %v1056_v54, %v2432_v29  ;;  %v1052_v46 = vmul.f32 %v1044_v61, %v2439_v57  ;;  %v2454_v5 = vadd.f32 %v1021_v63, %v863_v53  ;;  %v1023_v6 = vpop.f32.mrb[13].mxu1  ;;  %v1036_v54 = vmul.f32 0.5, %v2439_v57 }
 0x70d   :  { %v1053_v8 = vmul.f32 %v1045_v62, %v2444_v59  ;;  %v2457_v10 = vadd.f32 %v1023_v6, %v867_v60  ;;  %v1065_v47 = vadd.f32 %v1057_v2, %v2434_v30 }
 0x70e   :  { %v1042_v9 = vmul.f32 0.044715, %v2454_v5  ;;  %v1072_v11 = vmul.f32 0.7978845, %v1064_v3  ;;  %v1060_v12 = vmul.f32 %v1052_v46, %v2439_v57  ;;  %v1034_v46 = vmul.f32 0.5, %v2454_v5 }
 0x70f   :  { %v1043_v1 = vmul.f32 0.044715, %v2457_v10  ;;  %v1027_v26 = vpop.f32.mrb[14].mxu1  ;;  %v1073_v13 = vmul.f32 0.7978845, %v1065_v47  ;;  %v1061_v14 = vmul.f32 %v1053_v8, %v2444_v59  ;;  %v1035_v29 = vmul.f32 0.5, %v2457_v10 }
 0x710   :  { %v1050_v15 = vmul.f32 %v1042_v9, %v2454_v5  ;;  %v2465_v16 = vadd.f32 %v1027_v26, %v863_v53  ;;  %v1029_v0 = vpop.f32.mrb[15].mxu1  ;;  %1691 = vtanh.f32 %v1072_v11  ;;  %v1068_v17 = vadd.f32 %v1060_v12, %v2439_v57 }
 0x711   :  { %v1051_v18 = vmul.f32 %v1043_v1, %v2457_v10  ;;  %v1030_v20 = vadd.f32 %v1029_v0, %v867_v60  ;;  %1693 = vtanh.f32 %v1073_v13  ;;  %v1069_v22 = vadd.f32 %v1061_v14, %v2444_v59 }
 0x712   :  { %v1058_v23 = vmul.f32 %v1050_v15, %v2454_v5  ;;  %v1046_v24 = vmul.f32 0.044715, %v2465_v16  ;;  %v1076_v25 = vmul.f32 0.7978845, %v1068_v17  ;;  %v1038_v12 = vmul.f32 0.5, %v2465_v16 }
 0x713   :  { %v1047_v27 = vmul.f32 0.044715, %v1030_v20  ;;  %v1077_v28 = vmul.f32 0.7978845, %v1069_v22  ;;  %v1059_v31 = vmul.f32 %v1051_v18, %v2457_v10  ;;  %v1039_v11 = vmul.f32 0.5, %v1030_v20 }
 0x714   :  { %v1066_v32 = vadd.f32 %v1058_v23, %v2454_v5  ;;  %v1054_v33 = vmul.f32 %v1046_v24, %v2465_v16  ;;  %1695 = vtanh.f32 %v1076_v25  ;;  %v1170_v5 = vsub.s32 5, %v1880_v51  ;;  %v1707_v17 = vld [vmem:[%s2506_s1] sm:$0x3f]  ;;  %s1708_s1 = scalar_lea.vmem %s1332_s14, 256 }
 0x715   :  { %v1055_v34 = vmul.f32 %v1047_v27, %v1030_v20  ;;  %1697 = vtanh.f32 %v1077_v28  ;;  %v1067_v35 = vadd.f32 %v1059_v31, %v2457_v10  ;;  %p1709_p0 = scmp.ne.s32.totalorder %s1332_s14, %s1708_s1  ;;  %p1714_p2 = scmp.lt.s32.totalorder %s1708_s1, %s1708_s1 }
 0x716   :  { %v1074_v36 = vmul.f32 0.7978845, %v1066_v32  ;;  %v1062_v37 = vmul.f32 %v1054_v33, %v2465_v16  ;;  %v1171_v18 = vrot.slane %v1707_v17, %v1170_v5 }
 0x717   :  { %v1075_v38 = vmul.f32 0.7978845, %v1067_v35  ;;  %v1063_v19 = vmul.f32 %v1055_v34, %v1030_v20  ;;  %p1715_p3 = por %p1714_p2, %p1713_p1 }
 0x718   :  { %1699 = vtanh.f32 %v1074_v36  ;;  %v1070_v39 = vadd.f32 %v1062_v37, %v2465_v16 }
 0x719   :  { %1701 = vtanh.f32 %v1075_v38  ;;  %v1071_v40 = vadd.f32 %v1063_v19, %v1030_v20  ;;  %p1716_p4 = pnand %p1715_p3, %p1709_p0 }
 0x71a   :  { %v1692_v21 = vpop.eup %1691  ;;  %v1078_v41 = vmul.f32 0.7978845, %v1070_v39 }
 0x71b   :  { %v1694_v42 = vpop.eup %1693  ;;  %v1088_v43 = vadd.f32 1.0, %v1692_v21  ;;  %v1079_v44 = vmul.f32 0.7978845, %v1071_v40 }
 0x71c   :  { %v1089_v48 = vadd.f32 1.0, %v1694_v42  ;;  %1703 = vtanh.f32 %v1078_v41 }
 0x71d   :  { %1705 = vtanh.f32 %v1079_v44  ;;  %v1096_v58 = vmul.f32 %v1088_v43, %v1032_v49 }
 0x71e   :  { %v1696_v50 = vpop.eup %1695  ;;  %v1097_v52 = vmul.f32 %v1089_v48, %v1033_v45 }
 0x71f   :  { %v1698_v56 = vpop.eup %1697  ;;  %v1092_v53 = vadd.f32 1.0, %v1696_v50 }
 0x720   :  { %1236 = vmatprep.mubr.f32.mxu0 %v1097_v52  ;;  %v1093_v60 = vadd.f32 1.0, %v1698_v56 }
 0x721   :  { %1237 = vmatmul.mubr.f32.vlgmr.msra.gmra.mrb[12].mxu0 %v1096_v58  ;;  %v1100_v63 = vmul.f32 %v1092_v53, %v1036_v54 }
 0x722   :  { %v1700_v61 = vpop.eup %1699  ;;  %v1101_v62 = vmul.f32 %v1093_v60, %v1037_v55 }
 0x723   :  { %v1702_v30 = vpop.eup %1701  ;;  %v1090_v2 = vadd.f32 1.0, %v1700_v61 }
 0x724   :  { %1241 = vmatprep.mubr.f32.mxu0 %v1101_v62  ;;  %v1091_v3 = vadd.f32 1.0, %v1702_v30 }
 0x725   :  { %1242 = vmatmul.mubr.f32.gmra.mrb[14].mxu0 %v1100_v63  ;;  %v1098_v59 = vmul.f32 %v1090_v2, %v1034_v46 }
 0x726   :  { %v1704_v6 = vpop.eup %1703  ;;  %v1099_v8 = vmul.f32 %v1091_v3, %v1035_v29 }
 0x727   :  { %v1706_v47 = vpop.eup %1705  ;;  %v1094_v9 = vadd.f32 1.0, %v1704_v6 }
 0x728   :  { %1311 = vmatprep.mubr.f32.mxu1 %v1099_v8  ;;  %v1095_v57 = vadd.f32 1.0, %v1706_v47 }
 0x729   :  { %1312 = vmatmul.mubr.f32.vlgmr.msra.gmra.mrb[16].mxu1 %v1098_v59  ;;  %v1102_v26 = vmul.f32 %v1094_v9, %v1038_v12 }
 0x72a   :  { %v1103_v1 = vmul.f32 %v1095_v57, %v1039_v11 }
 0x72c   :  { %1316 = vmatprep.mubr.f32.mxu1 %v1103_v1 }
 0x72d   :  { %1317 = vmatmul.mubr.f32.gmra.mrb[18].mxu1 %v1102_v26 }
 0x7f4   :  { %v1458_v10 = vpop.f32.mrb[12].mxu0 }
 0x7f5   :  { %v1459_v13 = vpop.f32.mrb[13].mxu0 }
 0x7f6   :  { %v1460_v14 = vadd.f32 %v1459_v13, %v1458_v10 }
 0x7f8   :  { %v1461_v15 = vpop.f32.mrb[14].mxu0  ;;  %v1239_v16 = vadd.f32 %v1460_v14, %v1171_v18 }
 0x7f9   :  { %v1462_v0 = vpop.f32.mrb[15].mxu0 }
 0x7fa   :  { %v1463_v20 = vadd.f32 %v1462_v0, %v1461_v15 }
 0x7fc   :  { %v1496_v22 = vpop.f32.mrb[16].mxu1  ;;  %v1244_v31 = vadd.f32 %v1463_v20, %v1171_v18 }
 0x7fd   :  { %v1497_v23 = vpop.f32.mrb[17].mxu1 }
 0x7fe   :  { %v1498_v24 = vadd.f32 %v1497_v23, %v1496_v22 }
 0x800   :  { %v1314_v25 = vadd.f32 %v1498_v24, %v1239_v16  ;;  %v1499_v27 = vpop.f32.mrb[18].mxu1 }
 0x801   :  { %v1500_v28 = vpop.f32.mrb[19].mxu1 }
 0x802   :  { %v1322_v32 = vadd.f32 %v1314_v25, %v2158_v4  ;;  %v1501_v51 = vadd.f32 %v1500_v28, %v1499_v27 }
 0x804   :  { %1324 = vst.msk [vmem:[#allocation2] sm:$0xff] %vm39_vm0, %v1322_v32  ;;  %v1319_v33 = vadd.f32 %v1501_v51, %v1244_v31 }
 0x806   :  { %v1323_v34 = vadd.f32 %v1319_v33, %v2164_v7 }
 0x808   :  { %1325 = vst.msk [vmem:[#allocation2 + $0x8] sm:$0xff] %vm39_vm0, %v1323_v34 }
 0x809   :  { %1719 = shalt.err (!%p1716_p4)
}
 0x80a   :  { %s1720_s0 = scalar_lea.hbm %s2515_s10, 256 }
 0x80b   :  { %p1721_p5 = scmp.ne.s32.totalorder %s2515_s10, %s1720_s0  ;;  %p1724_p6 = scmp.lt.u32.totalorder %s1720_s0, %s2515_s10 }
 0x80d   :  { %p1726_p7 = pnand %p1724_p6, %p1721_p5 }
 0x80f   :  { %1729 = shalt.err (!%p1726_p7)
}
 0x810   :  { %s1735_s19 = smov 128   ;;  %s1736_s20 = smov 8  }
 0x811   :  { %1337 = dma.vmem_to_hbm [thread:$0]  %s1332_s14, 256, %s2515_s10, [#allocation3], %s1735_s19, %s1735_s19, %s1736_s20  }
 0x812   :  { %1730 = dma.done.wait [#allocation3], 256  }
 0x813   :  { %1731 = vsyncadd [#allocation3], 4294967040 }
 0x814   :  { %1341 = vsyncpa [#allocation3], 1 }

</bundles_post_ra>
